<compile_context>
chip_gen: v7x
topology: tpu7x:2x2x1
jax: 0.10.0
libtpu: 0.0.40
codegen_flags: <defaults>
</compile_context>

<pallas_src>
import functools

import jax
import jax.numpy as jnp
from jax.experimental import pallas as pl
from jax.experimental.pallas import tpu as pltpu

EPS = 1e-5
_VMEM_LIMIT = 32 * 1024 * 1024
_TM_TARGET = 512


def _round_up(x, m):
    return ((x + m - 1) // m) * m


# ----------------------------- Pallas kernels ---------------------------------
def _conv_stats_kernel(p_ref, w_ref, y_ref, stats_ref):
    """One M-tile of the K-folded conv: y = P @ W (bf16 in, f32 acc), plus
    per-tile (sum, sum_sq) partials for the two-pass BatchNorm."""
    y = jnp.dot(p_ref[...], w_ref[...], preferred_element_type=jnp.float32)
    y_ref[...] = y
    s1 = jnp.sum(y, axis=0, keepdims=True)        # (1, Cout)
    s2 = jnp.sum(y * y, axis=0, keepdims=True)    # (1, Cout)
    stats_ref[...] = jnp.concatenate([s1, s2], axis=0)[None, :, :]


def _bn_apply_kernel(*refs, relu, has_res):
    """out = y*scale + shift (+ res*res_scale + res_shift) (+ ReLU), per M-tile."""
    if has_res:
        y_ref, sc_ref, sh_ref, r_ref, rsc_ref, rsh_ref, out_ref = refs
    else:
        y_ref, sc_ref, sh_ref, out_ref = refs
    y = y_ref[...] * sc_ref[...] + sh_ref[...]
    if has_res:
        y = y + (r_ref[...] * rsc_ref[...] + rsh_ref[...])
    if relu:
        y = jnp.maximum(y, 0.0)
    out_ref[...] = y.astype(out_ref.dtype)


# ------------------------------ Pallas wrappers --------------------------------
def conv_stats_pallas(patches, w2d, tm):
    """patches: (Mp, K); w2d: (K, Cout). Returns (y f32 (Mp, Cout),
    stats f32 (nt, 2, Cout)), stats[i] = (row-sum, row-sum-of-squares) of tile i."""
    Mp, K = patches.shape
    Cout = w2d.shape[1]
    nt = Mp // tm
    return pl.pallas_call(
        _conv_stats_kernel,
        out_shape=(jax.ShapeDtypeStruct((Mp, Cout), jnp.float32),
                   jax.ShapeDtypeStruct((nt, 2, Cout), jnp.float32)),
        grid_spec=pltpu.PrefetchScalarGridSpec(
            num_scalar_prefetch=0,
            grid=(nt,),
            in_specs=[
                pl.BlockSpec((tm, K), lambda i: (i, 0)),
                pl.BlockSpec((K, Cout), lambda i: (0, 0)),   # resident weights
            ],
            out_specs=[
                pl.BlockSpec((tm, Cout), lambda i: (i, 0)),
                pl.BlockSpec((1, 2, Cout), lambda i: (i, 0, 0)),
            ]),
        compiler_params=pltpu.CompilerParams(
            dimension_semantics=("parallel",),
            vmem_limit_bytes=_VMEM_LIMIT),
    )(patches.astype(jnp.bfloat16), w2d.astype(jnp.bfloat16))


def bn_apply_pallas(y, scale, shift, tm, residual=None, res_scale=None,
                    res_shift=None, relu=True):
    """Per-M-tile BN apply (+ fused residual-branch BN apply + add) (+ ReLU)."""
    Mp, Cout = y.shape
    nt = Mp // tm
    row = lambda v: v.reshape(1, Cout).astype(jnp.float32)
    args = [y, row(scale), row(shift)]
    in_specs = [
        pl.BlockSpec((tm, Cout), lambda i: (i, 0)),
        pl.BlockSpec((1, Cout), lambda i: (0, 0)),
        pl.BlockSpec((1, Cout), lambda i: (0, 0)),
    ]
    if residual is not None:
        args += [residual.astype(jnp.float32), row(res_scale), row(res_shift)]
        in_specs += [
            pl.BlockSpec((tm, Cout), lambda i: (i, 0)),
            pl.BlockSpec((1, Cout), lambda i: (0, 0)),
            pl.BlockSpec((1, Cout), lambda i: (0, 0)),
        ]
    kernel = functools.partial(_bn_apply_kernel, relu=relu,
                               has_res=residual is not None)
    return pl.pallas_call(
        kernel,
        out_shape=jax.ShapeDtypeStruct((Mp, Cout), jnp.float32),
        grid_spec=pltpu.PrefetchScalarGridSpec(
            num_scalar_prefetch=0,
            grid=(nt,),
            in_specs=in_specs,
            out_specs=pl.BlockSpec((tm, Cout), lambda i: (i, 0))),
        compiler_params=pltpu.CompilerParams(
            dimension_semantics=("parallel",),
            vmem_limit_bytes=_VMEM_LIMIT),
    )(*args)


# ------------------------------ JAX glue --------------------------------------
def _w2d(w):
    """torch conv weight (Cout, Cin, kd, kh, kw) -> (kd*kh*kw*Cin, Cout)."""
    cout, cin, kd, kh, kw = w.shape
    return jnp.transpose(w, (2, 3, 4, 1, 0)).reshape(kd * kh * kw * cin, cout)


def _im2col_k(xp, k, stride, Do, Ho, Wo):
    """xp: channels-last (N, Dp, Hp, Wp, C), already padded.
    Returns (N*Do*Ho*Wo, k^3*C) with tap-major, channel-minor K ordering."""
    cols = []
    for kd in range(k):
        for kh in range(k):
            for kw in range(k):
                s = xp[:, kd:kd + (Do - 1) * stride + 1:stride,
                          kh:kh + (Ho - 1) * stride + 1:stride,
                          kw:kw + (Wo - 1) * stride + 1:stride, :]
                cols.append(s.reshape(-1, s.shape[-1]))
    return jnp.concatenate(cols, axis=1)


def _bn_scale_shift(stats, gamma, beta, m_rows):
    """Reduce per-tile partials to exact batch mean/var -> affine scale/shift."""
    s = jnp.sum(stats, axis=0)                           # (2, Cout)
    mean = s[0] / m_rows
    var = jnp.maximum(s[1] / m_rows - mean * mean, 0.0)  # biased batch var
    scale = gamma.astype(jnp.float32) * jax.lax.rsqrt(var + EPS)
    shift = beta.astype(jnp.float32) - mean * scale
    return scale, shift


def residual_block_pallas(x_ncdhw, params, stride):
    x = jnp.transpose(x_ncdhw, (0, 2, 3, 4, 1)).astype(jnp.float32)  # N,D,H,W,C
    N, D, H, W, Cin = x.shape
    Cout = params["w1"].shape[0]
    Do = (D + 2 - 3) // stride + 1
    Ho = (H + 2 - 3) // stride + 1
    Wo = (W + 2 - 3) // stride + 1
    M = N * Do * Ho * Wo

    tm = _TM_TARGET if M >= _TM_TARGET else _round_up(M, 8)
    Mp = _round_up(M, tm)

    def pad_rows(a):
        # zero rows are exact no-ops for the (sum, sum_sq) partials
        return a if Mp == M else jnp.pad(a, ((0, Mp - M), (0, 0)))

    # --- conv1 (3x3x3, stride, pad=1): raw conv + batch-stat partials ---------
    xp = jnp.pad(x, ((0, 0), (1, 1), (1, 1), (1, 1), (0, 0)))
    p1 = pad_rows(_im2col_k(xp, 3, stride, Do, Ho, Wo))
    y1, st1 = conv_stats_pallas(p1, _w2d(params["w1"]), tm)
    sc1, sh1 = _bn_scale_shift(st1, params["g1"], params["b1"], M)
    a1 = bn_apply_pallas(y1, sc1, sh1, tm, relu=True)        # BN1 + ReLU

    # --- conv2 (3x3x3, stride=1, pad=1) ---------------------------------------
    a1v = a1[:M].reshape(N, Do, Ho, Wo, Cout)
    a1p = jnp.pad(a1v, ((0, 0), (1, 1), (1, 1), (1, 1), (0, 0)))
    p2 = pad_rows(_im2col_k(a1p, 3, 1, Do, Ho, Wo))
    y2, st2 = conv_stats_pallas(p2, _w2d(params["w2"]), tm)
    sc2, sh2 = _bn_scale_shift(st2, params["g2"], params["b2"], M)

    # --- shortcut --------------------------------------------------------------
    if "w_sc" in params:
        xs = x[:, ::stride, ::stride, ::stride, :].reshape(M, Cin)
        ysc, stsc = conv_stats_pallas(pad_rows(xs), _w2d(params["w_sc"]), tm)
        scs, shs = _bn_scale_shift(stsc, params["g_sc"], params["b_sc"], M)
    else:
        ysc = pad_rows(x.reshape(M, Cin))                    # Cin == Cout here
        scs = jnp.ones((Cout,), jnp.float32)
        shs = jnp.zeros((Cout,), jnp.float32)

    # --- BN2 + shortcut-BN + residual add + final ReLU, fused -------------------
    out = bn_apply_pallas(y2, sc2, sh2, tm, residual=ysc,
                          res_scale=scs, res_shift=shs, relu=True)
    out = out[:M].reshape(N, Do, Ho, Wo, Cout)
    return jnp.transpose(out, (0, 4, 1, 2, 3))               # back to NCDHW


# --------------------------- pure-JAX reference --------------------------------
def residual_block_ref(x, params, stride):
    def conv(xx, w, s, pad):
        return jax.lax.conv_general_dilated(
            xx, w, window_strides=(s,) * 3, padding=[(pad, pad)] * 3,
            dimension_numbers=("NCDHW", "OIDHW", "NCDHW"),
            precision=jax.lax.Precision.HIGHEST)

    def bn(xx, gamma, beta):
        mean = jnp.mean(xx, axis=(0, 2, 3, 4), keepdims=True)
        var = jnp.mean((xx - mean) ** 2, axis=(0, 2, 3, 4), keepdims=True)
        return ((xx - mean) * jax.lax.rsqrt(var + EPS)
                * gamma.reshape(1, -1, 1, 1, 1) + beta.reshape(1, -1, 1, 1, 1))

    out = conv(x, params["w1"], stride, 1)
    out = jax.nn.relu(bn(out, params["g1"], params["b1"]))
    out = conv(out, params["w2"], 1, 1)
    out = bn(out, params["g2"], params["b2"])
    if "w_sc" in params:
        sc = bn(conv(x, params["w_sc"], stride, 0), params["g_sc"], params["b_sc"])
    else:
        sc = x
    return jax.nn.relu(out + sc)


# ------------------------------ params / main ----------------------------------
def make_params(key, cin, cout, stride):
    ks = jax.random.split(key, 8)
    p = {
        "w1": 0.1 * jax.random.normal(ks[0], (cout, cin, 3, 3, 3), jnp.float32),
        "g1": 1.0 + 0.1 * jax.random.normal(ks[1], (cout,), jnp.float32),
        "b1": 0.1 * jax.random.normal(ks[2], (cout,), jnp.float32),
        "w2": 0.1 * jax.random.normal(ks[3], (cout, cout, 3, 3, 3), jnp.float32),
        "g2": 1.0 + 0.1 * jax.random.normal(ks[4], (cout,), jnp.float32),
        "b2": 0.1 * jax.random.normal(ks[5], (cout,), jnp.float32),
    }
    if stride != 1 or cin != cout:
        p["w_sc"] = 0.1 * jax.random.normal(ks[6], (cout, cin, 1, 1, 1), jnp.float32)
        p["g_sc"] = jnp.ones((cout,), jnp.float32)
        p["b_sc"] = jnp.zeros((cout,), jnp.float32)
    return p


if __name__ == "__main__":
    key = jax.random.PRNGKey(0)
    kx, kp1, kp2 = jax.random.split(key, 3)

    block_fn = jax.jit(residual_block_pallas, static_argnums=2)

    # Config 1: downsampling block (stride=2, 4 -> 8 channels) -> conv shortcut.
    x = jax.random.normal(kx, (2, 4, 8, 8, 8), jnp.float32)  # NCDHW
    params1 = make_params(kp1, 4, 8, stride=2)
    out1 = jax.block_until_ready(block_fn(x, params1, 2))
    ref1 = residual_block_ref(x, params1, 2)
    assert out1.shape == (2, 8, 4, 4, 4)
    # bf16 MXU inputs -> ~1e-2-class absolute error vs the f32 reference
    assert jnp.allclose(out1, ref1, atol=5e-2, rtol=5e-2)

    # Config 2: identity-shortcut block (stride=1, 4 -> 4 channels).
    params2 = make_params(kp2, 4, 4, stride=1)
    out2 = jax.block_until_ready(block_fn(x, params2, 1))
    ref2 = residual_block_ref(x, params2, 1)
    assert out2.shape == (2, 4, 8, 8, 8)
    assert jnp.allclose(out2, ref2, atol=5e-2, rtol=5e-2)

    print("KERNEL_OK")
</pallas_src>

<mosaic_0001>
module attributes {stable_mosaic.version = 11 : i64} {
  func.func @_conv_stats_kernel(%arg0: i32, %arg1: memref<128x108xbf16, #tpu.memory_space<vmem>>, %arg2: memref<108x8xbf16, #tpu.memory_space<vmem>>, %arg3: memref<128x8xf32, #tpu.memory_space<vmem>>, %arg4: memref<1x2x8xf32, #tpu.memory_space<vmem>>) attributes {dimension_semantics = [#tpu.dimension_semantics<parallel>], iteration_bounds = array<i64: 1>, scalar_prefetch = 0 : i64, scratch_operands = 0 : i64, tpu.core_type = #tpu.core_type<tc>, window_params = [{transform_indices = @transform_0, window_bounds = array<i64: 128, 108>}, {pipeline_mode = #tpu.pipeline_mode<synchronous>, transform_indices = @transform_1, window_bounds = array<i64: 108, 8>}, {transform_indices = @transform_2, window_bounds = array<i64: 128, 8>}, {transform_indices = @transform_3, window_bounds = array<i64: 1, 2, 8>}]} {
    %c0 = arith.constant 0 : index
    %c0_0 = arith.constant 0 : index
    %0 = vector.load %arg1[%c0, %c0_0] : memref<128x108xbf16, #tpu.memory_space<vmem>>, vector<128x108xbf16>
    %c0_1 = arith.constant 0 : index
    %c0_2 = arith.constant 0 : index
    %1 = vector.load %arg2[%c0_1, %c0_2] : memref<108x8xbf16, #tpu.memory_space<vmem>>, vector<108x8xbf16>
    %cst = arith.constant dense<0.000000e+00> : vector<128x8xf32>
    %2 = tpu.matmul %0, %1, %cst {dimension_numbers = #tpu.dot_dimension_numbers<[1], [0], [0], [1], [0, 0, 1, 1], [], []>} : vector<128x108xbf16>, vector<108x8xbf16>, vector<128x8xf32> -> vector<128x8xf32>
    %c0_3 = arith.constant 0 : index
    %c0_4 = arith.constant 0 : index
    %3 = vector.load %arg3[%c0_3, %c0_4] : memref<128x8xf32, #tpu.memory_space<vmem>>, vector<128x8xf32>
    tpu.vector_store %arg3[%c0_3, %c0_4], %2 {strides = array<i32>} : memref<128x8xf32, #tpu.memory_space<vmem>>, vector<128x8xf32>,
    %cst_5 = arith.constant dense<0.000000e+00> : vector<8xf32>
    %4 = vector.multi_reduction <add>, %2, %cst_5 [0] : vector<128x8xf32> to vector<8xf32>
    %5 = vector.shape_cast %4 : vector<8xf32> to vector<1x8xf32>
    %6 = arith.mulf %2, %2 : vector<128x8xf32>
    %cst_6 = arith.constant dense<0.000000e+00> : vector<8xf32>
    %7 = vector.multi_reduction <add>, %6, %cst_6 [0] : vector<128x8xf32> to vector<8xf32>
    %8 = vector.shape_cast %7 : vector<8xf32> to vector<1x8xf32>
    %9 = tpu.concatenate %5, %8 in 0 : vector<1x8xf32>, vector<1x8xf32> -> vector<2x8xf32>
    %10 = vector.shape_cast %9 : vector<2x8xf32> to vector<1x2x8xf32>
    %c0_7 = arith.constant 0 : index
    %c0_8 = arith.constant 0 : index
    %c0_9 = arith.constant 0 : index
    %11 = vector.load %arg4[%c0_7, %c0_8, %c0_9] : memref<1x2x8xf32, #tpu.memory_space<vmem>>, vector<1x2x8xf32>
    tpu.vector_store %arg4[%c0_7, %c0_8, %c0_9], %10 {strides = array<i32>} : memref<1x2x8xf32, #tpu.memory_space<vmem>>, vector<1x2x8xf32>,
    return
  }
  func.func @transform_0(%arg0: i32) -> (i32, i32) {
    %c0_i32 = arith.constant 0 : i32
    %c0_i32_0 = arith.constant 0 : i32
    return %arg0, %c0_i32 : i32, i32
  }
  func.func @transform_1(%arg0: i32) -> (i32, i32) {
    %c0_i32 = arith.constant 0 : i32
    %c0_i32_0 = arith.constant 0 : i32
    %c0_i32_1 = arith.constant 0 : i32
    return %c0_i32, %c0_i32_0 : i32, i32
  }
  func.func @transform_2(%arg0: i32) -> (i32, i32) {
    %c0_i32 = arith.constant 0 : i32
    %c0_i32_0 = arith.constant 0 : i32
    return %arg0, %c0_i32 : i32, i32
  }
  func.func @transform_3(%arg0: i32) -> (i32, i32, i32) {
    %c0_i32 = arith.constant 0 : i32
    %c0_i32_0 = arith.constant 0 : i32
    %c0_i32_1 = arith.constant 0 : i32
    return %arg0, %c0_i32, %c0_i32_0 : i32, i32, i32
  }
}

module attributes {stable_mosaic.version = 11 : i64} {
  func.func @_bn_apply_kernel(%arg0: i32, %arg1: memref<128x8xf32, #tpu.memory_space<vmem>>, %arg2: memref<1x8xf32, #tpu.memory_space<vmem>>, %arg3: memref<1x8xf32, #tpu.memory_space<vmem>>, %arg4: memref<128x8xf32, #tpu.memory_space<vmem>>) attributes {dimension_semantics = [#tpu.dimension_semantics<parallel>], iteration_bounds = array<i64: 1>, scalar_prefetch = 0 : i64, scratch_operands = 0 : i64, tpu.core_type = #tpu.core_type<tc>, window_params = [{transform_indices = @transform_0, window_bounds = array<i64: 128, 8>}, {pipeline_mode = #tpu.pipeline_mode<synchronous>, transform_indices = @transform_1, window_bounds = array<i64: 1, 8>}, {pipeline_mode = #tpu.pipeline_mode<synchronous>, transform_indices = @transform_2, window_bounds = array<i64: 1, 8>}, {transform_indices = @transform_3, window_bounds = array<i64: 128, 8>}]} {
    %c0 = arith.constant 0 : index
    %c0_0 = arith.constant 0 : index
    %0 = vector.load %arg1[%c0, %c0_0] : memref<128x8xf32, #tpu.memory_space<vmem>>, vector<128x8xf32>
    %c0_1 = arith.constant 0 : index
    %c0_2 = arith.constant 0 : index
    %1 = vector.load %arg2[%c0_1, %c0_2] : memref<1x8xf32, #tpu.memory_space<vmem>>, vector<1x8xf32>
    %2 = vector.broadcast %1 : vector<1x8xf32> to vector<128x8xf32>
    %3 = arith.mulf %0, %2 : vector<128x8xf32>
    %c0_3 = arith.constant 0 : index
    %c0_4 = arith.constant 0 : index
    %4 = vector.load %arg3[%c0_3, %c0_4] : memref<1x8xf32, #tpu.memory_space<vmem>>, vector<1x8xf32>
    %5 = vector.broadcast %4 : vector<1x8xf32> to vector<128x8xf32>
    %6 = arith.addf %3, %5 : vector<128x8xf32>
    %cst = arith.constant 0.000000e+00 : f32
    %7 = vector.broadcast %cst : f32 to vector<128x8xf32>
    %8 = arith.maximumf %6, %7 : vector<128x8xf32>
    %c0_5 = arith.constant 0 : index
    %c0_6 = arith.constant 0 : index
    %9 = vector.load %arg4[%c0_5, %c0_6] : memref<128x8xf32, #tpu.memory_space<vmem>>, vector<128x8xf32>
    tpu.vector_store %arg4[%c0_5, %c0_6], %8 {strides = array<i32>} : memref<128x8xf32, #tpu.memory_space<vmem>>, vector<128x8xf32>,
    return
  }
  func.func @transform_0(%arg0: i32) -> (i32, i32) {
    %c0_i32 = arith.constant 0 : i32
    %c0_i32_0 = arith.constant 0 : i32
    return %arg0, %c0_i32 : i32, i32
  }
  func.func @transform_1(%arg0: i32) -> (i32, i32) {
    %c0_i32 = arith.constant 0 : i32
    %c0_i32_0 = arith.constant 0 : i32
    %c0_i32_1 = arith.constant 0 : i32
    return %c0_i32, %c0_i32_0 : i32, i32
  }
  func.func @transform_2(%arg0: i32) -> (i32, i32) {
    %c0_i32 = arith.constant 0 : i32
    %c0_i32_0 = arith.constant 0 : i32
    %c0_i32_1 = arith.constant 0 : i32
    return %c0_i32, %c0_i32_0 : i32, i32
  }
  func.func @transform_3(%arg0: i32) -> (i32, i32) {
    %c0_i32 = arith.constant 0 : i32
    %c0_i32_0 = arith.constant 0 : i32
    return %arg0, %c0_i32 : i32, i32
  }
}

module attributes {stable_mosaic.version = 11 : i64} {
  func.func @_conv_stats_kernel(%arg0: i32, %arg1: memref<128x216xbf16, #tpu.memory_space<vmem>>, %arg2: memref<216x8xbf16, #tpu.memory_space<vmem>>, %arg3: memref<128x8xf32, #tpu.memory_space<vmem>>, %arg4: memref<1x2x8xf32, #tpu.memory_space<vmem>>) attributes {dimension_semantics = [#tpu.dimension_semantics<parallel>], iteration_bounds = array<i64: 1>, scalar_prefetch = 0 : i64, scratch_operands = 0 : i64, tpu.core_type = #tpu.core_type<tc>, window_params = [{transform_indices = @transform_0, window_bounds = array<i64: 128, 216>}, {pipeline_mode = #tpu.pipeline_mode<synchronous>, transform_indices = @transform_1, window_bounds = array<i64: 216, 8>}, {transform_indices = @transform_2, window_bounds = array<i64: 128, 8>}, {transform_indices = @transform_3, window_bounds = array<i64: 1, 2, 8>}]} {
    %c0 = arith.constant 0 : index
    %c0_0 = arith.constant 0 : index
    %0 = vector.load %arg1[%c0, %c0_0] : memref<128x216xbf16, #tpu.memory_space<vmem>>, vector<128x216xbf16>
    %c0_1 = arith.constant 0 : index
    %c0_2 = arith.constant 0 : index
    %1 = vector.load %arg2[%c0_1, %c0_2] : memref<216x8xbf16, #tpu.memory_space<vmem>>, vector<216x8xbf16>
    %cst = arith.constant dense<0.000000e+00> : vector<128x8xf32>
    %2 = tpu.matmul %0, %1, %cst {dimension_numbers = #tpu.dot_dimension_numbers<[1], [0], [0], [1], [0, 0, 1, 1], [], []>} : vector<128x216xbf16>, vector<216x8xbf16>, vector<128x8xf32> -> vector<128x8xf32>
    %c0_3 = arith.constant 0 : index
    %c0_4 = arith.constant 0 : index
    %3 = vector.load %arg3[%c0_3, %c0_4] : memref<128x8xf32, #tpu.memory_space<vmem>>, vector<128x8xf32>
    tpu.vector_store %arg3[%c0_3, %c0_4], %2 {strides = array<i32>} : memref<128x8xf32, #tpu.memory_space<vmem>>, vector<128x8xf32>,
    %cst_5 = arith.constant dense<0.000000e+00> : vector<8xf32>
    %4 = vector.multi_reduction <add>, %2, %cst_5 [0] : vector<128x8xf32> to vector<8xf32>
    %5 = vector.shape_cast %4 : vector<8xf32> to vector<1x8xf32>
    %6 = arith.mulf %2, %2 : vector<128x8xf32>
    %cst_6 = arith.constant dense<0.000000e+00> : vector<8xf32>
    %7 = vector.multi_reduction <add>, %6, %cst_6 [0] : vector<128x8xf32> to vector<8xf32>
    %8 = vector.shape_cast %7 : vector<8xf32> to vector<1x8xf32>
    %9 = tpu.concatenate %5, %8 in 0 : vector<1x8xf32>, vector<1x8xf32> -> vector<2x8xf32>
    %10 = vector.shape_cast %9 : vector<2x8xf32> to vector<1x2x8xf32>
    %c0_7 = arith.constant 0 : index
    %c0_8 = arith.constant 0 : index
    %c0_9 = arith.constant 0 : index
    %11 = vector.load %arg4[%c0_7, %c0_8, %c0_9] : memref<1x2x8xf32, #tpu.memory_space<vmem>>, vector<1x2x8xf32>
    tpu.vector_store %arg4[%c0_7, %c0_8, %c0_9], %10 {strides = array<i32>} : memref<1x2x8xf32, #tpu.memory_space<vmem>>, vector<1x2x8xf32>,
    return
  }
  func.func @transform_0(%arg0: i32) -> (i32, i32) {
    %c0_i32 = arith.constant 0 : i32
    %c0_i32_0 = arith.constant 0 : i32
    return %arg0, %c0_i32 : i32, i32
  }
  func.func @transform_1(%arg0: i32) -> (i32, i32) {
    %c0_i32 = arith.constant 0 : i32
    %c0_i32_0 = arith.constant 0 : i32
    %c0_i32_1 = arith.constant 0 : i32
    return %c0_i32, %c0_i32_0 : i32, i32
  }
  func.func @transform_2(%arg0: i32) -> (i32, i32) {
    %c0_i32 = arith.constant 0 : i32
    %c0_i32_0 = arith.constant 0 : i32
    return %arg0, %c0_i32 : i32, i32
  }
  func.func @transform_3(%arg0: i32) -> (i32, i32, i32) {
    %c0_i32 = arith.constant 0 : i32
    %c0_i32_0 = arith.constant 0 : i32
    %c0_i32_1 = arith.constant 0 : i32
    return %arg0, %c0_i32, %c0_i32_0 : i32, i32, i32
  }
}

module attributes {stable_mosaic.version = 11 : i64} {
  func.func @_conv_stats_kernel(%arg0: i32, %arg1: memref<128x4xbf16, #tpu.memory_space<vmem>>, %arg2: memref<4x8xbf16, #tpu.memory_space<vmem>>, %arg3: memref<128x8xf32, #tpu.memory_space<vmem>>, %arg4: memref<1x2x8xf32, #tpu.memory_space<vmem>>) attributes {dimension_semantics = [#tpu.dimension_semantics<parallel>], iteration_bounds = array<i64: 1>, scalar_prefetch = 0 : i64, scratch_operands = 0 : i64, tpu.core_type = #tpu.core_type<tc>, window_params = [{transform_indices = @transform_0, window_bounds = array<i64: 128, 4>}, {pipeline_mode = #tpu.pipeline_mode<synchronous>, transform_indices = @transform_1, window_bounds = array<i64: 4, 8>}, {transform_indices = @transform_2, window_bounds = array<i64: 128, 8>}, {transform_indices = @transform_3, window_bounds = array<i64: 1, 2, 8>}]} {
    %c0 = arith.constant 0 : index
    %c0_0 = arith.constant 0 : index
    %0 = vector.load %arg1[%c0, %c0_0] : memref<128x4xbf16, #tpu.memory_space<vmem>>, vector<128x4xbf16>
    %c0_1 = arith.constant 0 : index
    %c0_2 = arith.constant 0 : index
    %1 = vector.load %arg2[%c0_1, %c0_2] : memref<4x8xbf16, #tpu.memory_space<vmem>>, vector<4x8xbf16>
    %cst = arith.constant dense<0.000000e+00> : vector<128x8xf32>
    %2 = tpu.matmul %0, %1, %cst {dimension_numbers = #tpu.dot_dimension_numbers<[1], [0], [0], [1], [0, 0, 1, 1], [], []>} : vector<128x4xbf16>, vector<4x8xbf16>, vector<128x8xf32> -> vector<128x8xf32>
    %c0_3 = arith.constant 0 : index
    %c0_4 = arith.constant 0 : index
    %3 = vector.load %arg3[%c0_3, %c0_4] : memref<128x8xf32, #tpu.memory_space<vmem>>, vector<128x8xf32>
    tpu.vector_store %arg3[%c0_3, %c0_4], %2 {strides = array<i32>} : memref<128x8xf32, #tpu.memory_space<vmem>>, vector<128x8xf32>,
    %cst_5 = arith.constant dense<0.000000e+00> : vector<8xf32>
    %4 = vector.multi_reduction <add>, %2, %cst_5 [0] : vector<128x8xf32> to vector<8xf32>
    %5 = vector.shape_cast %4 : vector<8xf32> to vector<1x8xf32>
    %6 = arith.mulf %2, %2 : vector<128x8xf32>
    %cst_6 = arith.constant dense<0.000000e+00> : vector<8xf32>
    %7 = vector.multi_reduction <add>, %6, %cst_6 [0] : vector<128x8xf32> to vector<8xf32>
    %8 = vector.shape_cast %7 : vector<8xf32> to vector<1x8xf32>
    %9 = tpu.concatenate %5, %8 in 0 : vector<1x8xf32>, vector<1x8xf32> -> vector<2x8xf32>
    %10 = vector.shape_cast %9 : vector<2x8xf32> to vector<1x2x8xf32>
    %c0_7 = arith.constant 0 : index
    %c0_8 = arith.constant 0 : index
    %c0_9 = arith.constant 0 : index
    %11 = vector.load %arg4[%c0_7, %c0_8, %c0_9] : memref<1x2x8xf32, #tpu.memory_space<vmem>>, vector<1x2x8xf32>
    tpu.vector_store %arg4[%c0_7, %c0_8, %c0_9], %10 {strides = array<i32>} : memref<1x2x8xf32, #tpu.memory_space<vmem>>, vector<1x2x8xf32>,
    return
  }
  func.func @transform_0(%arg0: i32) -> (i32, i32) {
    %c0_i32 = arith.constant 0 : i32
    %c0_i32_0 = arith.constant 0 : i32
    return %arg0, %c0_i32 : i32, i32
  }
  func.func @transform_1(%arg0: i32) -> (i32, i32) {
    %c0_i32 = arith.constant 0 : i32
    %c0_i32_0 = arith.constant 0 : i32
    %c0_i32_1 = arith.constant 0 : i32
    return %c0_i32, %c0_i32_0 : i32, i32
  }
  func.func @transform_2(%arg0: i32) -> (i32, i32) {
    %c0_i32 = arith.constant 0 : i32
    %c0_i32_0 = arith.constant 0 : i32
    return %arg0, %c0_i32 : i32, i32
  }
  func.func @transform_3(%arg0: i32) -> (i32, i32, i32) {
    %c0_i32 = arith.constant 0 : i32
    %c0_i32_0 = arith.constant 0 : i32
    %c0_i32_1 = arith.constant 0 : i32
    return %arg0, %c0_i32, %c0_i32_0 : i32, i32, i32
  }
}

module attributes {stable_mosaic.version = 11 : i64} {
  func.func @_bn_apply_kernel(%arg0: i32, %arg1: memref<128x8xf32, #tpu.memory_space<vmem>>, %arg2: memref<1x8xf32, #tpu.memory_space<vmem>>, %arg3: memref<1x8xf32, #tpu.memory_space<vmem>>, %arg4: memref<128x8xf32, #tpu.memory_space<vmem>>, %arg5: memref<1x8xf32, #tpu.memory_space<vmem>>, %arg6: memref<1x8xf32, #tpu.memory_space<vmem>>, %arg7: memref<128x8xf32, #tpu.memory_space<vmem>>) attributes {dimension_semantics = [#tpu.dimension_semantics<parallel>], iteration_bounds = array<i64: 1>, scalar_prefetch = 0 : i64, scratch_operands = 0 : i64, tpu.core_type = #tpu.core_type<tc>, window_params = [{transform_indices = @transform_0, window_bounds = array<i64: 128, 8>}, {pipeline_mode = #tpu.pipeline_mode<synchronous>, transform_indices = @transform_1, window_bounds = array<i64: 1, 8>}, {pipeline_mode = #tpu.pipeline_mode<synchronous>, transform_indices = @transform_2, window_bounds = array<i64: 1, 8>}, {transform_indices = @transform_3, window_bounds = array<i64: 128, 8>}, {pipeline_mode = #tpu.pipeline_mode<synchronous>, transform_indices = @transform_4, window_bounds = array<i64: 1, 8>}, {pipeline_mode = #tpu.pipeline_mode<synchronous>, transform_indices = @transform_5, window_bounds = array<i64: 1, 8>}, {transform_indices = @transform_6, window_bounds = array<i64: 128, 8>}]} {
    %c0 = arith.constant 0 : index
    %c0_0 = arith.constant 0 : index
    %0 = vector.load %arg1[%c0, %c0_0] : memref<128x8xf32, #tpu.memory_space<vmem>>, vector<128x8xf32>
    %c0_1 = arith.constant 0 : index
    %c0_2 = arith.constant 0 : index
    %1 = vector.load %arg2[%c0_1, %c0_2] : memref<1x8xf32, #tpu.memory_space<vmem>>, vector<1x8xf32>
    %2 = vector.broadcast %1 : vector<1x8xf32> to vector<128x8xf32>
    %3 = arith.mulf %0, %2 : vector<128x8xf32>
    %c0_3 = arith.constant 0 : index
    %c0_4 = arith.constant 0 : index
    %4 = vector.load %arg3[%c0_3, %c0_4] : memref<1x8xf32, #tpu.memory_space<vmem>>, vector<1x8xf32>
    %5 = vector.broadcast %4 : vector<1x8xf32> to vector<128x8xf32>
    %6 = arith.addf %3, %5 : vector<128x8xf32>
    %c0_5 = arith.constant 0 : index
    %c0_6 = arith.constant 0 : index
    %7 = vector.load %arg4[%c0_5, %c0_6] : memref<128x8xf32, #tpu.memory_space<vmem>>, vector<128x8xf32>
    %c0_7 = arith.constant 0 : index
    %c0_8 = arith.constant 0 : index
    %8 = vector.load %arg5[%c0_7, %c0_8] : memref<1x8xf32, #tpu.memory_space<vmem>>, vector<1x8xf32>
    %9 = vector.broadcast %8 : vector<1x8xf32> to vector<128x8xf32>
    %10 = arith.mulf %7, %9 : vector<128x8xf32>
    %c0_9 = arith.constant 0 : index
    %c0_10 = arith.constant 0 : index
    %11 = vector.load %arg6[%c0_9, %c0_10] : memref<1x8xf32, #tpu.memory_space<vmem>>, vector<1x8xf32>
    %12 = vector.broadcast %11 : vector<1x8xf32> to vector<128x8xf32>
    %13 = arith.addf %10, %12 : vector<128x8xf32>
    %14 = arith.addf %6, %13 : vector<128x8xf32>
    %cst = arith.constant 0.000000e+00 : f32
    %15 = vector.broadcast %cst : f32 to vector<128x8xf32>
    %16 = arith.maximumf %14, %15 : vector<128x8xf32>
    %c0_11 = arith.constant 0 : index
    %c0_12 = arith.constant 0 : index
    %17 = vector.load %arg7[%c0_11, %c0_12] : memref<128x8xf32, #tpu.memory_space<vmem>>, vector<128x8xf32>
    tpu.vector_store %arg7[%c0_11, %c0_12], %16 {strides = array<i32>} : memref<128x8xf32, #tpu.memory_space<vmem>>, vector<128x8xf32>,
    return
  }
  func.func @transform_0(%arg0: i32) -> (i32, i32) {
    %c0_i32 = arith.constant 0 : i32
    %c0_i32_0 = arith.constant 0 : i32
    return %arg0, %c0_i32 : i32, i32
  }
  func.func @transform_1(%arg0: i32) -> (i32, i32) {
    %c0_i32 = arith.constant 0 : i32
    %c0_i32_0 = arith.constant 0 : i32
    %c0_i32_1 = arith.constant 0 : i32
    return %c0_i32, %c0_i32_0 : i32, i32
  }
  func.func @transform_2(%arg0: i32) -> (i32, i32) {
    %c0_i32 = arith.constant 0 : i32
    %c0_i32_0 = arith.constant 0 : i32
    %c0_i32_1 = arith.constant 0 : i32
    return %c0_i32, %c0_i32_0 : i32, i32
  }
  func.func @transform_3(%arg0: i32) -> (i32, i32) {
    %c0_i32 = arith.constant 0 : i32
    %c0_i32_0 = arith.constant 0 : i32
    return %arg0, %c0_i32 : i32, i32
  }
  func.func @transform_4(%arg0: i32) -> (i32, i32) {
    %c0_i32 = arith.constant 0 : i32
    %c0_i32_0 = arith.constant 0 : i32
    %c0_i32_1 = arith.constant 0 : i32
    return %c0_i32, %c0_i32_0 : i32, i32
  }
  func.func @transform_5(%arg0: i32) -> (i32, i32) {
    %c0_i32 = arith.constant 0 : i32
    %c0_i32_0 = arith.constant 0 : i32
    %c0_i32_1 = arith.constant 0 : i32
    return %c0_i32, %c0_i32_0 : i32, i32
  }
  func.func @transform_6(%arg0: i32) -> (i32, i32) {
    %c0_i32 = arith.constant 0 : i32
    %c0_i32_0 = arith.constant 0 : i32
    return %arg0, %c0_i32 : i32, i32
  }
}

</mosaic_0001>

<bundles_post_ra>
// kernel: residual_block_pallas.6
= control target key start
LH: loop header
LB: loop body
LE: loop exit
PB: predicated region body
PF: predicated region fallthrough
CT: control target
= control target key end

     0   :  { %vm92_vm0 = vcmask 64512   ;;  %s271_s0 = inlined_call_operand.vmem [shape: f32[128,8], index: 0, kind: input, shape index: {}]   ;;  %s272_s1 = inlined_call_operand.vmem [shape: f32[1,8], index: 1, kind: input, shape index: {}]   ;;  %s273_s2 = inlined_call_operand.vmem [shape: f32[1,8], index: 2, kind: input, shape index: {}]   ;;  %s274_s3 = inlined_call_operand.vmem [shape: f32[128,8], index: 3, kind: output, shape index: {}]  }
   0x1   :  { %v14_v0 = vld [vmem:[%s271_s0] sm:$0xff]  ;;  %v15_v4 = vld [vmem:[%s271_s0 + $0x8] sm:$0xff]  ;;  %v16_v5 = vld [vmem:[%s271_s0 + $0x10] sm:$0xff] }
   0x2   :  { %v113_v1 = vld [vmem:[%s272_s1] ss:$0 sm:$0xff]  ;;  %v17_v6 = vld [vmem:[%s271_s0 + $0x18] sm:$0xff]  ;;  %v19_v11 = vld [vmem:[%s271_s0 + $0x28] sm:$0xff] }
   0x3   :  { %v144_v2 = vld [vmem:[%s273_s2] ss:$0 sm:$0xff]  ;;  %v37_v3 = vmul.f32 %v113_v1, %v14_v0  ;;  %v38_v7 = vmul.f32 %v113_v1, %v15_v4  ;;  %v39_v8 = vmul.f32 %v113_v1, %v16_v5  ;;  %v40_v9 = vmul.f32 %v113_v1, %v17_v6  ;;  %v20_v12 = vld [vmem:[%s271_s0 + $0x30] sm:$0xff]  ;;  %v21_v17 = vld [vmem:[%s271_s0 + $0x38] sm:$0xff] }
   0x4   :  { %v18_v10 = vld [vmem:[%s271_s0 + $0x20] sm:$0xff]  ;;  %v42_v15 = vmul.f32 %v113_v1, %v19_v11  ;;  %v43_v16 = vmul.f32 %v113_v1, %v20_v12  ;;  %v44_v21 = vmul.f32 %v113_v1, %v21_v17  ;;  %v23_v27 = vld [vmem:[%s271_s0 + $0x48] sm:$0xff]  ;;  %v24_v28 = vld [vmem:[%s271_s0 + $0x50] sm:$0xff] }
   0x5   :  { %v60_v13 = vadd.f32 %v144_v2, %v37_v3  ;;  %v41_v14 = vmul.f32 %v113_v1, %v18_v10  ;;  %v61_v18 = vadd.f32 %v144_v2, %v38_v7  ;;  %v62_v19 = vadd.f32 %v144_v2, %v39_v8  ;;  %v22_v22 = vld [vmem:[%s271_s0 + $0x40] sm:$0xff]  ;;  %v25_v29 = vld [vmem:[%s271_s0 + $0x58] sm:$0xff]  ;;  %v27_v35 = vld [vmem:[%s271_s0 + $0x68] sm:$0xff] }
   0x6   :  { %v63_v20 = vadd.f32 %v144_v2, %v40_v9  ;;  %v65_v25 = vadd.f32 %v144_v2, %v42_v15  ;;  %v66_v26 = vadd.f32 %v144_v2, %v43_v16  ;;  %v67_v33 = vadd.f32 %v144_v2, %v44_v21  ;;  %v26_v34 = vld [vmem:[%s271_s0 + $0x60] sm:$0xff]  ;;  %v28_v36 = vld [vmem:[%s271_s0 + $0x70] sm:$0xff]  ;;  %v29_v41 = vld [vmem:[%s271_s0 + $0x78] sm:$0xff] }
   0x7   :  { %v76_v23 = vmax.f32 %v60_v13, 0.0  ;;  %v64_v24 = vadd.f32 %v144_v2, %v41_v14  ;;  %v77_v30 = vmax.f32 %v61_v18, 0.0  ;;  %v78_v31 = vmax.f32 %v62_v19, 0.0 }
   0x8   :  { %v79_v32 = vmax.f32 %v63_v20, 0.0  ;;  %v81_v38 = vmax.f32 %v65_v25, 0.0  ;;  %v82_v39 = vmax.f32 %v66_v26, 0.0  ;;  %v45_v40 = vmul.f32 %v113_v1, %v22_v22 }
   0x9   :  { %93 = vst.msk [vmem:[%s274_s3] sm:$0xff] %vm92_vm0, %v76_v23  ;;  %v80_v37 = vmax.f32 %v64_v24, 0.0  ;;  %94 = vst.msk [vmem:[%s274_s3 + $0x8] sm:$0xff] %vm92_vm0, %v77_v30  ;;  %v83_v42 = vmax.f32 %v67_v33, 0.0  ;;  %v46_v43 = vmul.f32 %v113_v1, %v23_v27  ;;  %v47_v44 = vmul.f32 %v113_v1, %v24_v28 }
   0xa   :  { %95 = vst.msk [vmem:[%s274_s3 + $0x10] sm:$0xff] %vm92_vm0, %v78_v31  ;;  %96 = vst.msk [vmem:[%s274_s3 + $0x18] sm:$0xff] %vm92_vm0, %v79_v32  ;;  %v48_v45 = vmul.f32 %v113_v1, %v25_v29  ;;  %v68_v46 = vadd.f32 %v144_v2, %v45_v40  ;;  %v49_v47 = vmul.f32 %v113_v1, %v26_v34 }
   0xb   :  { %97 = vst.msk [vmem:[%s274_s3 + $0x20] sm:$0xff] %vm92_vm0, %v80_v37  ;;  %98 = vst.msk [vmem:[%s274_s3 + $0x28] sm:$0xff] %vm92_vm0, %v81_v38  ;;  %v50_v48 = vmul.f32 %v113_v1, %v27_v35  ;;  %v51_v49 = vmul.f32 %v113_v1, %v28_v36  ;;  %v69_v50 = vadd.f32 %v144_v2, %v46_v43 }
   0xc   :  { %99 = vst.msk [vmem:[%s274_s3 + $0x30] sm:$0xff] %vm92_vm0, %v82_v39  ;;  %100 = vst.msk [vmem:[%s274_s3 + $0x38] sm:$0xff] %vm92_vm0, %v83_v42  ;;  %v70_v51 = vadd.f32 %v144_v2, %v47_v44  ;;  %v71_v52 = vadd.f32 %v144_v2, %v48_v45  ;;  %v52_v53 = vmul.f32 %v113_v1, %v29_v41  ;;  %v84_v54 = vmax.f32 %v68_v46, 0.0 }
   0xd   :  { %v72_v55 = vadd.f32 %v144_v2, %v49_v47  ;;  %v73_v56 = vadd.f32 %v144_v2, %v50_v48  ;;  %v74_v57 = vadd.f32 %v144_v2, %v51_v49  ;;  %v85_v58 = vmax.f32 %v69_v50, 0.0 }
   0xe   :  { %v86_v59 = vmax.f32 %v70_v51, 0.0  ;;  %v87_v60 = vmax.f32 %v71_v52, 0.0  ;;  %v75_v61 = vadd.f32 %v144_v2, %v52_v53  ;;  %101 = vst.msk [vmem:[%s274_s3 + $0x40] sm:$0xff] %vm92_vm0, %v84_v54 }
   0xf   :  { %v88_v62 = vmax.f32 %v72_v55, 0.0  ;;  %v89_v63 = vmax.f32 %v73_v56, 0.0  ;;  %v90_v0 = vmax.f32 %v74_v57, 0.0  ;;  %102 = vst.msk [vmem:[%s274_s3 + $0x48] sm:$0xff] %vm92_vm0, %v85_v58 }
  0x10   :  { %103 = vst.msk [vmem:[%s274_s3 + $0x50] sm:$0xff] %vm92_vm0, %v86_v59  ;;  %104 = vst.msk [vmem:[%s274_s3 + $0x58] sm:$0xff] %vm92_vm0, %v87_v60  ;;  %v91_v1 = vmax.f32 %v75_v61, 0.0 }
  0x11   :  { %105 = vst.msk [vmem:[%s274_s3 + $0x60] sm:$0xff] %vm92_vm0, %v88_v62  ;;  %106 = vst.msk [vmem:[%s274_s3 + $0x68] sm:$0xff] %vm92_vm0, %v89_v63 }
  0x12   :  { %107 = vst.msk [vmem:[%s274_s3 + $0x70] sm:$0xff] %vm92_vm0, %v90_v0  ;;  %108 = vst.msk [vmem:[%s274_s3 + $0x78] sm:$0xff] %vm92_vm0, %v91_v1 }

// kernel: residual_block_pallas.5
= control target key start
LH: loop header
LB: loop body
LE: loop exit
PB: predicated region body
PF: predicated region fallthrough
CT: control target
= control target key end

     0   :  { %vm125_vm0 = vcmask 883712   ;;  %vm150_vm1 = vcmask 1045504   ;;  %vm251_vm2 = vcmask 64512   ;;  %vm358_vm3 = vcmask 1040384   ;;  %s659_s1 = inlined_call_operand.vmem [shape: bf16[108,8], index: 1, kind: input, shape index: {}]   ;;  %s660_s0 = inlined_call_operand.vmem [shape: bf16[128,108], index: 0, kind: input, shape index: {}]   ;;  %s661_s2 = inlined_call_operand.vmem [shape: f32[128,8], index: 2, kind: output, shape index: {0}]   ;;  %s662_s3 = inlined_call_operand.vmem [shape: f32[1,2,8], index: 3, kind: output, shape index: {1}]  }
   0x1   :  { %v454_v0 = vld [vmem:[%s659_s1] sm:$0xff]   ;;  %v455_v1 = vld [vmem:[%s659_s1 + $0x8] sm:$0xff]   ;;  %v456_v2 = vld [vmem:[%s659_s1 + $0x10] sm:$0xff]   ;;  %vm360_vm4 = vcmask 58368  }
   0x2   :  { %408 = vmatprep.subr.bf16.mxu0 %v454_v0  ;;  %438 = vmatprep.subr.bf16.mxu1 %v454_v0  ;;  %v461_v3 = vld [vmem:[%s660_s0] sm:$0xff]   ;;  %v457_v4 = vld [vmem:[%s659_s1 + $0x18] sm:$0xff]   ;;  %v459_v7 = vld [vmem:[%s659_s1 + $0x28] sm:$0xff]  }
   0x3   :  { %409 = vmatpush3.bf16.msra.mxu0 %v454_v0  ;;  %445 = vmatpush3.bf16.msra.mxu1 %v454_v0  ;;  %v465_v5 = vld [vmem:[%s660_s0 + $0x20] sm:$0xff]   ;;  %v460_v8 = vld [vmem:[%s659_s1 + $0x30] sm:$0x3f]   ;;  %v462_v10 = vld [vmem:[%s660_s0 + $0x8] sm:$0xff]  }
   0x4   :  { %410 = vmatprep.subr.bf16.mxu0 %v455_v1  ;;  %439 = vmatprep.subr.bf16.mxu1 %v455_v1  ;;  %v458_v6 = vld [vmem:[%s659_s1 + $0x20] sm:$0xff]   ;;  %v152_v9 = vsel %vm150_vm1, %v460_v8, 0  ;;  %v466_v11 = vld [vmem:[%s660_s0 + $0x28] sm:$0xff]   ;;  %v463_v12 = vld [vmem:[%s660_s0 + $0x10] sm:$0xff]  }
   0x5   :  { %422 = vmatprep.mubr.msk.bf16.mxu0 %vm125_vm0, %v461_v3  ;;  %430 = vmatprep.mubr.msk.bf16.mxu1 %vm125_vm0, %v465_v5  ;;  %v467_v13 = vld [vmem:[%s660_s0 + $0x30] sm:$0xff]   ;;  %v464_v14 = vld [vmem:[%s660_s0 + $0x18] sm:$0xff]  }
   0x6   :  { %v468_v15 = vld [vmem:[%s660_s0 + $0x38] sm:$0xff]  }
   0x7   :  { %411 = vmatpush3.bf16.msra.mxu0 %v455_v1  ;;  %446 = vmatpush3.bf16.msra.mxu1 %v455_v1 }
   0x8   :  { %412 = vmatprep.subr.bf16.mxu0 %v456_v2  ;;  %440 = vmatprep.subr.bf16.mxu1 %v456_v2 }
   0xb   :  { %413 = vmatpush3.bf16.msra.mxu0 %v456_v2  ;;  %447 = vmatpush3.bf16.msra.mxu1 %v456_v2 }
   0xc   :  { %414 = vmatprep.subr.bf16.mxu0 %v457_v4  ;;  %441 = vmatprep.subr.bf16.mxu1 %v457_v4 }
   0xf   :  { %415 = vmatpush3.bf16.msra.mxu0 %v457_v4  ;;  %448 = vmatpush3.bf16.msra.mxu1 %v457_v4 }
  0x10   :  { %416 = vmatprep.subr.bf16.mxu0 %v458_v6  ;;  %442 = vmatprep.subr.bf16.mxu1 %v458_v6 }
  0x13   :  { %417 = vmatpush3.bf16.msra.mxu0 %v458_v6  ;;  %449 = vmatpush3.bf16.msra.mxu1 %v458_v6 }
  0x14   :  { %418 = vmatprep.subr.bf16.mxu0 %v459_v7  ;;  %443 = vmatprep.subr.bf16.mxu1 %v459_v7 }
  0x17   :  { %419 = vmatpush3.bf16.msra.mxu0 %v459_v7  ;;  %450 = vmatpush3.bf16.msra.mxu1 %v459_v7 }
  0x18   :  { %452 = vmatprep.subr.msk.bf16.mxu0 %vm150_vm1, %v460_v8  ;;  %453 = vmatprep.subr.msk.bf16.mxu1 %vm150_vm1, %v460_v8 }
  0x1b   :  { %421 = vmatpush3.bf16.msra.mxu0 %v152_v9  ;;  %451 = vmatpush3.bf16.msra.mxu1 %v152_v9 }
  0x1e   :  { %423 = vmatmul.mubr.msk.bf16.vlgmr.msra.gmra.mrb[0].mxu0 %vm125_vm0, %v462_v10  ;;  %431 = vmatmul.mubr.msk.bf16.vlgmr.msra.gmra.mrb[0].mxu1 %vm125_vm0, %v466_v11 }
  0x1f   :  { %426 = vmatprep.mubr.msk.bf16.mxu0 %vm125_vm0, %v463_v12  ;;  %434 = vmatprep.mubr.msk.bf16.mxu1 %vm125_vm0, %v467_v13 }
  0x26   :  { %427 = vmatmul.mubr.msk.bf16.gmra.mrb[4].mxu0 %vm125_vm0, %v464_v14  ;;  %435 = vmatmul.mubr.msk.bf16.gmra.mrb[4].mxu1 %vm125_vm0, %v468_v15 }
  0xf1   :  { %v424_v16 = vpop.f32.mrb[0].mxu0  ;;  %v542_v17 = vpop.f32.mrb[0].mxu1 }
  0xf2   :  { %254 = vst.msk [vmem:[%s661_s2 + $0x10] sm:$0xff] %vm251_vm2, %v424_v16  ;;  %v188_v18 = vpop.f32.mrb[1].mxu0  ;;  %262 = vst.msk [vmem:[%s661_s2 + $0x50] sm:$0xff] %vm251_vm2, %v542_v17  ;;  %v220_v19 = vpop.f32.mrb[1].mxu1  ;;  %v307_v25 = vmul.f32 %v424_v16, %v424_v16  ;;  %v271_v30 = vsel %vm251_vm2, %v424_v16, 0.0  ;;  %v315_v11 = vmul.f32 %v542_v17, %v542_v17  ;;  %v287_v15 = vsel %vm251_vm2, %v542_v17, 0.0 }
  0xf3   :  { %252 = vst.msk [vmem:[%s661_s2] sm:$0xff] %vm251_vm2, %v188_v18  ;;  %v305_v20 = vmul.f32 %v188_v18, %v188_v18  ;;  %v425_v21 = vpop.f32.mrb[2].mxu0  ;;  %260 = vst.msk [vmem:[%s661_s2 + $0x40] sm:$0xff] %vm251_vm2, %v220_v19  ;;  %v561_v22 = vpop.f32.mrb[2].mxu1  ;;  %v268_v26 = vsel %vm251_vm2, %v188_v18, 0.0  ;;  %v313_v62 = vmul.f32 %v220_v19, %v220_v19  ;;  %v283_v3 = vsel %vm251_vm2, %v220_v19, 0.0 }
  0xf4   :  { %255 = vst.msk [vmem:[%s661_s2 + $0x18] sm:$0xff] %vm251_vm2, %v425_v21  ;;  %v191_v23 = vpop.f32.mrb[3].mxu0  ;;  %263 = vst.msk [vmem:[%s661_s2 + $0x58] sm:$0xff] %vm251_vm2, %v561_v22  ;;  %v223_v24 = vpop.f32.mrb[3].mxu1  ;;  %v308_v32 = vmul.f32 %v425_v21, %v425_v21  ;;  %v324_v36 = vsel %vm251_vm2, %v307_v25, 0.0  ;;  %v273_v37 = vsel %vm251_vm2, %v425_v21, 0.0  ;;  %v316_v16 = vmul.f32 %v561_v22, %v561_v22 }
  0xf5   :  { %253 = vst.msk [vmem:[%s661_s2 + $0x8] sm:$0xff] %vm251_vm2, %v191_v23  ;;  %v269_v27 = vsel %vm251_vm2, %v191_v23, 0.0  ;;  %v306_v28 = vmul.f32 %v191_v23, %v191_v23  ;;  %261 = vst.msk [vmem:[%s661_s2 + $0x48] sm:$0xff] %vm251_vm2, %v223_v24  ;;  %v321_v31 = vsel %vm251_vm2, %v305_v20, 0.0  ;;  %v336_v7 = vsel %vm251_vm2, %v313_v62, 0.0 }
  0xf6   :  { %v270_v29 = vadd.f32 %v269_v27, %v268_v26  ;;  %v326_v44 = vsel %vm251_vm2, %v308_v32, 0.0  ;;  %v314_v8 = vmul.f32 %v223_v24, %v223_v24  ;;  %v285_v12 = vsel %vm251_vm2, %v223_v24, 0.0 }
  0xf7   :  { %v322_v33 = vsel %vm251_vm2, %v306_v28, 0.0  ;;  %v340_v23 = vsel %vm251_vm2, %v315_v11, 0.0  ;;  %v289_v25 = vsel %vm251_vm2, %v561_v22, 0.0  ;;  %v342_v28 = vsel %vm251_vm2, %v316_v16, 0.0 }
  0xf8   :  { %v272_v34 = vadd.f32 %v271_v30, %v270_v29  ;;  %v323_v35 = vadd.f32 %v322_v33, %v321_v31  ;;  %v338_v18 = vsel %vm251_vm2, %v314_v8, 0.0 }
  0xf9   :  { %v428_v38 = vpop.f32.mrb[4].mxu0  ;;  %v587_v39 = vpop.f32.mrb[4].mxu1 }
  0xfa   :  { %v325_v40 = vadd.f32 %v324_v36, %v323_v35  ;;  %258 = vst.msk [vmem:[%s661_s2 + $0x30] sm:$0xff] %vm251_vm2, %v428_v38  ;;  %v204_v41 = vpop.f32.mrb[5].mxu0  ;;  %v274_v42 = vadd.f32 %v273_v37, %v272_v34  ;;  %266 = vst.msk [vmem:[%s661_s2 + $0x70] sm:$0xff] %vm251_vm2, %v587_v39  ;;  %v236_v43 = vpop.f32.mrb[5].mxu1  ;;  %v311_v53 = vmul.f32 %v428_v38, %v428_v38  ;;  %v279_v59 = vsel %vm251_vm2, %v428_v38, 0.0 }
  0xfb   :  { %256 = vst.msk [vmem:[%s661_s2 + $0x20] sm:$0xff] %vm251_vm2, %v204_v41  ;;  %v275_v45 = vsel %vm251_vm2, %v204_v41, 0.0  ;;  %v309_v46 = vmul.f32 %v204_v41, %v204_v41  ;;  %v429_v47 = vpop.f32.mrb[6].mxu0  ;;  %264 = vst.msk [vmem:[%s661_s2 + $0x60] sm:$0xff] %vm251_vm2, %v236_v43  ;;  %v437_v48 = vpop.f32.mrb[6].mxu1  ;;  %v317_v19 = vmul.f32 %v236_v43, %v236_v43  ;;  %v291_v24 = vsel %vm251_vm2, %v236_v43, 0.0 }
  0xfc   :  { %v276_v49 = vadd.f32 %v275_v45, %v274_v42  ;;  %v327_v50 = vadd.f32 %v326_v44, %v325_v40  ;;  %259 = vst.msk [vmem:[%s661_s2 + $0x38] sm:$0xff] %vm251_vm2, %v429_v47  ;;  %v207_v51 = vpop.f32.mrb[7].mxu0  ;;  %267 = vst.msk [vmem:[%s661_s2 + $0x78] sm:$0xff] %vm251_vm2, %v437_v48  ;;  %v239_v52 = vpop.f32.mrb[7].mxu1  ;;  %v312_v60 = vmul.f32 %v429_v47, %v429_v47  ;;  %v332_v1 = vsel %vm251_vm2, %v311_v53, 0.0 }
  0xfd   :  { %v328_v54 = vsel %vm251_vm2, %v309_v46, 0.0  ;;  %257 = vst.msk [vmem:[%s661_s2 + $0x28] sm:$0xff] %vm251_vm2, %v207_v51  ;;  %v277_v55 = vsel %vm251_vm2, %v207_v51, 0.0  ;;  %v310_v56 = vmul.f32 %v207_v51, %v207_v51  ;;  %265 = vst.msk [vmem:[%s661_s2 + $0x68] sm:$0xff] %vm251_vm2, %v239_v52  ;;  %v281_v2 = vsel %vm251_vm2, %v429_v47, 0.0 }
  0xfe   :  { %v329_v57 = vadd.f32 %v328_v54, %v327_v50  ;;  %v278_v58 = vadd.f32 %v277_v55, %v276_v49  ;;  %v334_v6 = vsel %vm251_vm2, %v312_v60, 0.0  ;;  %v344_v17 = vsel %vm251_vm2, %v317_v19, 0.0 }
  0xff   :  { %v330_v61 = vsel %vm251_vm2, %v310_v56, 0.0  ;;  %v318_v29 = vmul.f32 %v239_v52, %v239_v52  ;;  %v319_v32 = vmul.f32 %v587_v39, %v587_v39  ;;  %v293_v33 = vsel %vm251_vm2, %v239_v52, 0.0 }
 0x100   :  { %v280_v63 = vadd.f32 %v279_v59, %v278_v58  ;;  %v331_v0 = vadd.f32 %v330_v61, %v329_v57  ;;  %v295_v22 = vsel %vm251_vm2, %v587_v39, 0.0  ;;  %v320_v36 = vmul.f32 %v437_v48, %v437_v48 }
 0x101   :  { %v346_v37 = vsel %vm251_vm2, %v318_v29, 0.0  ;;  %v348_v41 = vsel %vm251_vm2, %v319_v32, 0.0  ;;  %v297_v42 = vsel %vm251_vm2, %v437_v48, 0.0 }
 0x102   :  { %v333_v4 = vadd.f32 %v332_v1, %v331_v0  ;;  %v282_v5 = vadd.f32 %v281_v2, %v280_v63  ;;  %v350_v45 = vsel %vm251_vm2, %v320_v36, 0.0 }
 0x104   :  { %v284_v9 = vadd.f32 %v283_v3, %v282_v5  ;;  %v335_v10 = vadd.f32 %v334_v6, %v333_v4 }
 0x106   :  { %v337_v13 = vadd.f32 %v336_v7, %v335_v10  ;;  %v286_v14 = vadd.f32 %v285_v12, %v284_v9 }
 0x108   :  { %v288_v20 = vadd.f32 %v287_v15, %v286_v14  ;;  %v339_v21 = vadd.f32 %v338_v18, %v337_v13 }
 0x10a   :  { %v341_v26 = vadd.f32 %v340_v23, %v339_v21  ;;  %v290_v27 = vadd.f32 %v289_v25, %v288_v20 }
 0x10c   :  { %v292_v30 = vadd.f32 %v291_v24, %v290_v27  ;;  %v343_v31 = vadd.f32 %v342_v28, %v341_v26 }
 0x10e   :  { %v345_v34 = vadd.f32 %v344_v17, %v343_v31  ;;  %v294_v35 = vadd.f32 %v293_v33, %v292_v30 }
 0x110   :  { %v296_v38 = vadd.f32 %v295_v22, %v294_v35  ;;  %v347_v40 = vadd.f32 %v346_v37, %v345_v34 }
 0x112   :  { %v298_v43 = vadd.f32 %v297_v42, %v296_v38  ;;  %v349_v44 = vadd.f32 %v348_v41, %v347_v40 }
 0x114   :  { %v299_v46 = vrot.slane %v298_v43, 4  ;;  %v351_v47 = vadd.f32 %v350_v45, %v349_v44 }
 0x116   :  { %v300_v49 = vadd.f32 %v299_v46, %v298_v43  ;;  %v352_v50 = vrot.slane %v351_v47, 4 }
 0x118   :  { %v301_v51 = vrot.slane %v300_v49, 2  ;;  %v353_v52 = vadd.f32 %v352_v50, %v351_v47 }
 0x11a   :  { %v302_v39 = vadd.f32 %v301_v51, %v300_v49  ;;  %v354_v53 = vrot.slane %v353_v52, 2 }
 0x11c   :  { %v303_v54 = vrot.slane %v302_v39, 1  ;;  %v355_v55 = vadd.f32 %v354_v53, %v353_v52 }
 0x11e   :  { %v356_v56 = vrot.slane %v355_v55, 1  ;;  %v304_v57 = vadd.f32 %v303_v54, %v302_v39 }
 0x120   :  { %v357_v58 = vadd.f32 %v356_v56, %v355_v55 }
 0x122   :  { %v359_v48 = vsel %vm358_vm3, %v304_v57, %v357_v58 }
 0x123   :  { %361 = vst.msk [vmem:[%s662_s3] sm:$0x3] %vm360_vm4, %v359_v48 }

// kernel: residual_block_pallas.7
= control target key start
LH: loop header
LB: loop body
LE: loop exit
PB: predicated region body
PF: predicated region fallthrough
CT: control target
= control target key end

     0   :  { %v560_v0 = vmov 0   ;;  %vm210_vm0 = vcmask 719872   ;;  %vm235_vm1 = vcmask 1043456   ;;  %vm336_vm2 = vcmask 64512   ;;  %s836_s1 = inlined_call_operand.vmem [shape: bf16[216,8], index: 1, kind: input, shape index: {}]   ;;  %s837_s0 = inlined_call_operand.vmem [shape: bf16[128,216], index: 0, kind: input, shape index: {}]   ;;  %s838_s2 = inlined_call_operand.vmem [shape: f32[128,8], index: 2, kind: output, shape index: {0}]   ;;  %s839_s3 = inlined_call_operand.vmem [shape: f32[1,2,8], index: 3, kind: output, shape index: {1}]  }
   0x1   :  { %239 = vmatprep.subr.bf16.mxu0 %v560_v0  ;;  %v522_v1 = vld [vmem:[%s836_s1] sm:$0xff]   ;;  %493 = vmatprep.subr.bf16.mxu1 %v560_v0  ;;  %v523_v2 = vld [vmem:[%s836_s1 + $0x8] sm:$0xff]   ;;  %v524_v3 = vld [vmem:[%s836_s1 + $0x10] sm:$0xff]   ;;  %vm443_vm3 = vcmask 1040384   ;;  %vm445_vm4 = vcmask 58368  }
   0x2   :  { %240 = vmatpush1.bf16.msra.mxu0 %v522_v1  ;;  %507 = vmatpush1.bf16.msra.mxu1 %v522_v1  ;;  %v525_v4 = vld [vmem:[%s836_s1 + $0x18] sm:$0xff]   ;;  %v526_v5 = vld [vmem:[%s836_s1 + $0x20] sm:$0xff]   ;;  %v527_v8 = vld [vmem:[%s836_s1 + $0x28] sm:$0xff]  }
   0x3   :  { %241 = vmatprep.subr.bf16.mxu0 %v560_v0  ;;  %494 = vmatprep.subr.bf16.mxu1 %v560_v0  ;;  %v538_v6 = vld [vmem:[%s837_s0 + $0x4] ss:$8 sps:$4 sm:$0xff]   ;;  %v528_v9 = vld [vmem:[%s836_s1 + $0x30] sm:$0xff]   ;;  %v529_v10 = vld [vmem:[%s836_s1 + $0x38] sm:$0xff]  }
   0x4   :  { %485 = vmatprep.mubr.msk.bf16.mxu0 %vm210_vm0, %v538_v6  ;;  %v544_v7 = vld [vmem:[%s837_s0 + $0x44] ss:$8 sps:$4 sm:$0xff]   ;;  %v532_v13 = vld [vmem:[%s836_s1 + $0x50] sm:$0xff]   ;;  %v533_v14 = vld [vmem:[%s836_s1 + $0x58] sm:$0xff]  }
   0x5   :  { %489 = vmatprep.mubr.msk.bf16.mxu1 %vm210_vm0, %v544_v7  ;;  %v530_v11 = vld [vmem:[%s836_s1 + $0x40] sm:$0xff]   ;;  %v531_v12 = vld [vmem:[%s836_s1 + $0x48] sm:$0xff]   ;;  %v539_v20 = vld [vmem:[%s837_s0 + $0x14] ss:$8 sps:$4 sm:$0xff]  }
   0x6   :  { %242 = vmatpush1.bf16.msra.mxu0 %v523_v2  ;;  %508 = vmatpush1.bf16.msra.mxu1 %v523_v2  ;;  %v534_v15 = vld [vmem:[%s836_s1 + $0x60] sm:$0xff]   ;;  %v535_v16 = vld [vmem:[%s836_s1 + $0x68] ss:$0 sps:$4 sm:$0xff]   ;;  %v548_v21 = vld [vmem:[%s837_s0 + $0x54] ss:$8 sps:$4 sm:$0xff]  }
   0x7   :  { %243 = vmatprep.subr.bf16.mxu0 %v560_v0  ;;  %495 = vmatprep.subr.bf16.mxu1 %v560_v0  ;;  %v237_v17 = vsel %vm235_vm1, %v535_v16, 0  ;;  %v536_v18 = vld [vmem:[%s837_s0] ss:$8 sps:$4 sm:$0xff]   ;;  %v541_v22 = vld [vmem:[%s837_s0 + $0x10] ss:$8 sps:$4 sm:$0xff]  }
   0x8   :  { %v542_v19 = vld [vmem:[%s837_s0 + $0x40] ss:$8 sps:$4 sm:$0xff]   ;;  %v550_v23 = vld [vmem:[%s837_s0 + $0x50] ss:$8 sps:$4 sm:$0xff]   ;;  %v545_v24 = vld [vmem:[%s837_s0 + $0x24] ss:$8 sps:$4 sm:$0xff]  }
   0x9   :  { %v554_v25 = vld [vmem:[%s837_s0 + $0x64] ss:$8 sps:$4 sm:$0xff]   ;;  %v547_v26 = vld [vmem:[%s837_s0 + $0x20] ss:$8 sps:$4 sm:$0xff]   ;;  %v551_v28 = vld [vmem:[%s837_s0 + $0x34] ss:$8 sps:$4 sm:$0xff]  }
   0xa   :  { %244 = vmatpush1.bf16.msra.mxu0 %v524_v3  ;;  %509 = vmatpush1.bf16.msra.mxu1 %v524_v3  ;;  %v556_v27 = vld [vmem:[%s837_s0 + $0x60] ss:$8 sps:$4 sm:$0xff]   ;;  %v557_v29 = vld [vmem:[%s837_s0 + $0x74] ss:$8 sps:$4 sm:$0xff]   ;;  %v553_v30 = vld [vmem:[%s837_s0 + $0x30] ss:$8 sps:$4 sm:$0xff]  }
   0xb   :  { %245 = vmatprep.subr.bf16.mxu0 %v560_v0  ;;  %496 = vmatprep.subr.bf16.mxu1 %v560_v0  ;;  %v559_v31 = vld [vmem:[%s837_s0 + $0x70] ss:$8 sps:$4 sm:$0xff]  }
   0xe   :  { %246 = vmatpush1.bf16.msra.mxu0 %v525_v4  ;;  %510 = vmatpush1.bf16.msra.mxu1 %v525_v4 }
   0xf   :  { %247 = vmatprep.subr.bf16.mxu0 %v560_v0  ;;  %497 = vmatprep.subr.bf16.mxu1 %v560_v0 }
  0x12   :  { %248 = vmatpush1.bf16.msra.mxu0 %v526_v5  ;;  %511 = vmatpush1.bf16.msra.mxu1 %v526_v5 }
  0x13   :  { %249 = vmatprep.subr.bf16.mxu0 %v560_v0  ;;  %498 = vmatprep.subr.bf16.mxu1 %v560_v0 }
  0x16   :  { %250 = vmatpush1.bf16.msra.mxu0 %v527_v8  ;;  %512 = vmatpush1.bf16.msra.mxu1 %v527_v8 }
  0x17   :  { %251 = vmatprep.subr.bf16.mxu0 %v560_v0  ;;  %499 = vmatprep.subr.bf16.mxu1 %v560_v0 }
  0x1a   :  { %252 = vmatpush1.bf16.msra.mxu0 %v528_v9  ;;  %513 = vmatpush1.bf16.msra.mxu1 %v528_v9 }
  0x1b   :  { %253 = vmatprep.subr.bf16.mxu0 %v560_v0  ;;  %500 = vmatprep.subr.bf16.mxu1 %v560_v0 }
  0x1e   :  { %254 = vmatpush1.bf16.msra.mxu0 %v529_v10  ;;  %514 = vmatpush1.bf16.msra.mxu1 %v529_v10 }
  0x1f   :  { %255 = vmatprep.subr.bf16.mxu0 %v560_v0  ;;  %501 = vmatprep.subr.bf16.mxu1 %v560_v0 }
  0x22   :  { %256 = vmatpush1.bf16.msra.mxu0 %v530_v11  ;;  %515 = vmatpush1.bf16.msra.mxu1 %v530_v11 }
  0x23   :  { %257 = vmatprep.subr.bf16.mxu0 %v560_v0  ;;  %502 = vmatprep.subr.bf16.mxu1 %v560_v0 }
  0x26   :  { %258 = vmatpush1.bf16.msra.mxu0 %v531_v12  ;;  %516 = vmatpush1.bf16.msra.mxu1 %v531_v12 }
  0x27   :  { %259 = vmatprep.subr.bf16.mxu0 %v560_v0  ;;  %503 = vmatprep.subr.bf16.mxu1 %v560_v0 }
  0x2a   :  { %260 = vmatpush1.bf16.msra.mxu0 %v532_v13  ;;  %517 = vmatpush1.bf16.msra.mxu1 %v532_v13 }
  0x2b   :  { %261 = vmatprep.subr.bf16.mxu0 %v560_v0  ;;  %504 = vmatprep.subr.bf16.mxu1 %v560_v0 }
  0x2e   :  { %262 = vmatpush1.bf16.msra.mxu0 %v533_v14  ;;  %518 = vmatpush1.bf16.msra.mxu1 %v533_v14 }
  0x2f   :  { %263 = vmatprep.subr.bf16.mxu0 %v560_v0  ;;  %505 = vmatprep.subr.bf16.mxu1 %v560_v0 }
  0x32   :  { %264 = vmatpush1.bf16.msra.mxu0 %v534_v15  ;;  %519 = vmatpush1.bf16.msra.mxu1 %v534_v15 }
  0x33   :  { %265 = vmatprep.subr.bf16.mxu0 %v560_v0  ;;  %506 = vmatprep.subr.bf16.mxu1 %v560_v0 }
  0x36   :  { %266 = vmatpush1.bf16.msra.mxu0 %v237_v17  ;;  %520 = vmatpush1.bf16.msra.mxu1 %v237_v17 }
  0x39   :  { %272 = vmatmul.mubr.bf16.vlgmr.msra.gmra.mrb[0].mxu0 %v536_v18  ;;  %304 = vmatmul.mubr.bf16.vlgmr.msra.gmra.mrb[0].mxu1 %v542_v19 }
  0x3a   :  { %486 = vmatprep.mubr.msk.bf16.mxu0 %vm210_vm0, %v539_v20  ;;  %490 = vmatprep.mubr.msk.bf16.mxu1 %vm210_vm0, %v548_v21 }
  0x41   :  { %280 = vmatmul.mubr.bf16.gmra.mrb[4].mxu0 %v541_v22  ;;  %312 = vmatmul.mubr.bf16.gmra.mrb[4].mxu1 %v550_v23 }
  0x42   :  { %487 = vmatprep.mubr.msk.bf16.mxu0 %vm210_vm0, %v545_v24  ;;  %491 = vmatprep.mubr.msk.bf16.mxu1 %vm210_vm0, %v554_v25 }
  0x49   :  { %288 = vmatmul.mubr.bf16.gmra.mrb[8].mxu0 %v547_v26  ;;  %320 = vmatmul.mubr.bf16.gmra.mrb[8].mxu1 %v556_v27 }
  0x4a   :  { %488 = vmatprep.mubr.msk.bf16.mxu0 %vm210_vm0, %v551_v28  ;;  %492 = vmatprep.mubr.msk.bf16.mxu1 %vm210_vm0, %v557_v29 }
  0x51   :  { %296 = vmatmul.mubr.bf16.gmra.mrb[12].mxu0 %v553_v30  ;;  %328 = vmatmul.mubr.bf16.gmra.mrb[12].mxu1 %v559_v31 }
 0x10c   :  { %v273_v32 = vpop.f32.mrb[0].mxu0  ;;  %v707_v33 = vpop.f32.mrb[0].mxu1 }
 0x10d   :  { %337 = vst.msk [vmem:[%s838_s2] sm:$0xff] %vm336_vm2, %v273_v32  ;;  %v390_v34 = vmul.f32 %v273_v32, %v273_v32  ;;  %v275_v35 = vpop.f32.mrb[1].mxu0  ;;  %345 = vst.msk [vmem:[%s838_s2 + $0x40] sm:$0xff] %vm336_vm2, %v707_v33  ;;  %v307_v36 = vpop.f32.mrb[1].mxu1  ;;  %v353_v39 = vsel %vm336_vm2, %v273_v32, 0.0  ;;  %v398_v29 = vmul.f32 %v707_v33, %v707_v33 }
 0x10e   :  { %v276_v37 = vpop.f32.mrb[2].mxu0  ;;  %v718_v38 = vpop.f32.mrb[2].mxu1 }
 0x10f   :  { %338 = vst.msk [vmem:[%s838_s2 + $0x8] sm:$0xff] %vm336_vm2, %v276_v37  ;;  %v354_v40 = vsel %vm336_vm2, %v276_v37, 0.0  ;;  %v391_v41 = vmul.f32 %v276_v37, %v276_v37  ;;  %v278_v42 = vpop.f32.mrb[3].mxu0  ;;  %346 = vst.msk [vmem:[%s838_s2 + $0x48] sm:$0xff] %vm336_vm2, %v718_v38  ;;  %v310_v43 = vpop.f32.mrb[3].mxu1  ;;  %v406_v45 = vsel %vm336_vm2, %v390_v34, 0.0 }
 0x110   :  { %v355_v44 = vadd.f32 %v354_v40, %v353_v39  ;;  %v368_v39 = vsel %vm336_vm2, %v707_v33, 0.0  ;;  %v399_v40 = vmul.f32 %v718_v38, %v718_v38 }
 0x111   :  { %v407_v46 = vsel %vm336_vm2, %v391_v41, 0.0 }
 0x112   :  { %v408_v47 = vadd.f32 %v407_v46, %v406_v45  ;;  %v370_v45 = vsel %vm336_vm2, %v718_v38, 0.0 }
 0x114   :  { %v281_v48 = vpop.f32.mrb[4].mxu0  ;;  %v733_v49 = vpop.f32.mrb[4].mxu1 }
 0x115   :  { %339 = vst.msk [vmem:[%s838_s2 + $0x10] sm:$0xff] %vm336_vm2, %v281_v48  ;;  %v356_v50 = vsel %vm336_vm2, %v281_v48, 0.0  ;;  %v392_v51 = vmul.f32 %v281_v48, %v281_v48  ;;  %v283_v52 = vpop.f32.mrb[5].mxu0  ;;  %347 = vst.msk [vmem:[%s838_s2 + $0x50] sm:$0xff] %vm336_vm2, %v733_v49  ;;  %v315_v53 = vpop.f32.mrb[5].mxu1  ;;  %v400_v46 = vmul.f32 %v733_v49, %v733_v49  ;;  %v372_v33 = vsel %vm336_vm2, %v733_v49, 0.0 }
 0x116   :  { %v357_v54 = vadd.f32 %v356_v50, %v355_v44  ;;  %v284_v55 = vpop.f32.mrb[6].mxu0  ;;  %v745_v56 = vpop.f32.mrb[6].mxu1  ;;  %v421_v44 = vsel %vm336_vm2, %v398_v29, 0.0  ;;  %v423_v50 = vsel %vm336_vm2, %v399_v40, 0.0 }
 0x117   :  { %v409_v57 = vsel %vm336_vm2, %v392_v51, 0.0  ;;  %340 = vst.msk [vmem:[%s838_s2 + $0x18] sm:$0xff] %vm336_vm2, %v284_v55  ;;  %v358_v58 = vsel %vm336_vm2, %v284_v55, 0.0  ;;  %v393_v59 = vmul.f32 %v284_v55, %v284_v55  ;;  %v286_v60 = vpop.f32.mrb[7].mxu0  ;;  %348 = vst.msk [vmem:[%s838_s2 + $0x58] sm:$0xff] %vm336_vm2, %v745_v56  ;;  %v318_v61 = vpop.f32.mrb[7].mxu1  ;;  %v401_v51 = vmul.f32 %v745_v56, %v745_v56 }
 0x118   :  { %v410_v62 = vadd.f32 %v409_v57, %v408_v47  ;;  %v359_v63 = vadd.f32 %v358_v58, %v357_v54  ;;  %v425_v54 = vsel %vm336_vm2, %v400_v46, 0.0  ;;  %v374_v38 = vsel %vm336_vm2, %v745_v56, 0.0 }
 0x119   :  { %v411_v0 = vsel %vm336_vm2, %v393_v59, 0.0  ;;  %v427_v59 = vsel %vm336_vm2, %v401_v51, 0.0 }
 0x11a   :  { %v412_v1 = vadd.f32 %v411_v0, %v410_v62 }
 0x11c   :  { %v289_v2 = vpop.f32.mrb[8].mxu0  ;;  %v759_v3 = vpop.f32.mrb[8].mxu1 }
 0x11d   :  { %341 = vst.msk [vmem:[%s838_s2 + $0x20] sm:$0xff] %vm336_vm2, %v289_v2  ;;  %v360_v4 = vsel %vm336_vm2, %v289_v2, 0.0  ;;  %v394_v5 = vmul.f32 %v289_v2, %v289_v2  ;;  %v291_v6 = vpop.f32.mrb[9].mxu0  ;;  %349 = vst.msk [vmem:[%s838_s2 + $0x60] sm:$0xff] %vm336_vm2, %v759_v3  ;;  %v323_v7 = vpop.f32.mrb[9].mxu1  ;;  %v402_v55 = vmul.f32 %v759_v3, %v759_v3  ;;  %v376_v49 = vsel %vm336_vm2, %v759_v3, 0.0 }
 0x11e   :  { %v361_v8 = vadd.f32 %v360_v4, %v359_v63  ;;  %v292_v9 = vpop.f32.mrb[10].mxu0  ;;  %v324_v10 = vpop.f32.mrb[10].mxu1 }
 0x11f   :  { %v413_v11 = vsel %vm336_vm2, %v394_v5, 0.0  ;;  %342 = vst.msk [vmem:[%s838_s2 + $0x28] sm:$0xff] %vm336_vm2, %v292_v9  ;;  %v362_v12 = vsel %vm336_vm2, %v292_v9, 0.0  ;;  %v395_v13 = vmul.f32 %v292_v9, %v292_v9  ;;  %v294_v14 = vpop.f32.mrb[11].mxu0  ;;  %350 = vst.msk [vmem:[%s838_s2 + $0x68] sm:$0xff] %vm336_vm2, %v324_v10  ;;  %v326_v15 = vpop.f32.mrb[11].mxu1  ;;  %v403_v60 = vmul.f32 %v324_v10, %v324_v10 }
 0x120   :  { %v414_v16 = vadd.f32 %v413_v11, %v412_v1  ;;  %v363_v17 = vadd.f32 %v362_v12, %v361_v8  ;;  %v429_v0 = vsel %vm336_vm2, %v402_v55, 0.0  ;;  %v378_v1 = vsel %vm336_vm2, %v324_v10, 0.0 }
 0x121   :  { %v415_v18 = vsel %vm336_vm2, %v395_v13, 0.0  ;;  %v431_v5 = vsel %vm336_vm2, %v403_v60, 0.0 }
 0x122   :  { %v416_v19 = vadd.f32 %v415_v18, %v414_v16 }
 0x124   :  { %v297_v20 = vpop.f32.mrb[12].mxu0  ;;  %v329_v21 = vpop.f32.mrb[12].mxu1 }
 0x125   :  { %343 = vst.msk [vmem:[%s838_s2 + $0x30] sm:$0xff] %vm336_vm2, %v297_v20  ;;  %v364_v22 = vsel %vm336_vm2, %v297_v20, 0.0  ;;  %v396_v23 = vmul.f32 %v297_v20, %v297_v20  ;;  %v299_v24 = vpop.f32.mrb[13].mxu0  ;;  %351 = vst.msk [vmem:[%s838_s2 + $0x70] sm:$0xff] %vm336_vm2, %v329_v21  ;;  %v331_v25 = vpop.f32.mrb[13].mxu1  ;;  %v404_v61 = vmul.f32 %v329_v21, %v329_v21  ;;  %v380_v56 = vsel %vm336_vm2, %v329_v21, 0.0 }
 0x126   :  { %v365_v26 = vadd.f32 %v364_v22, %v363_v17  ;;  %v300_v27 = vpop.f32.mrb[14].mxu0  ;;  %v332_v28 = vpop.f32.mrb[14].mxu1 }
 0x127   :  { %v417_v30 = vsel %vm336_vm2, %v396_v23, 0.0  ;;  %344 = vst.msk [vmem:[%s838_s2 + $0x38] sm:$0xff] %vm336_vm2, %v300_v27  ;;  %v366_v31 = vsel %vm336_vm2, %v300_v27, 0.0  ;;  %v397_v32 = vmul.f32 %v300_v27, %v300_v27  ;;  %v302_v34 = vpop.f32.mrb[15].mxu0  ;;  %352 = vst.msk [vmem:[%s838_s2 + $0x78] sm:$0xff] %vm336_vm2, %v332_v28  ;;  %v334_v35 = vpop.f32.mrb[15].mxu1  ;;  %v405_v7 = vmul.f32 %v332_v28, %v332_v28 }
 0x128   :  { %v418_v36 = vadd.f32 %v417_v30, %v416_v19  ;;  %v367_v37 = vadd.f32 %v366_v31, %v365_v26  ;;  %v433_v6 = vsel %vm336_vm2, %v404_v61, 0.0  ;;  %v382_v3 = vsel %vm336_vm2, %v332_v28, 0.0 }
 0x129   :  { %v419_v41 = vsel %vm336_vm2, %v397_v32, 0.0  ;;  %v435_v13 = vsel %vm336_vm2, %v405_v7, 0.0 }
 0x12a   :  { %v369_v42 = vadd.f32 %v368_v39, %v367_v37  ;;  %v420_v43 = vadd.f32 %v419_v41, %v418_v36 }
 0x12c   :  { %v371_v47 = vadd.f32 %v370_v45, %v369_v42  ;;  %v422_v48 = vadd.f32 %v421_v44, %v420_v43 }
 0x12e   :  { %v424_v52 = vadd.f32 %v423_v50, %v422_v48  ;;  %v373_v53 = vadd.f32 %v372_v33, %v371_v47 }
 0x130   :  { %v375_v57 = vadd.f32 %v374_v38, %v373_v53  ;;  %v426_v58 = vadd.f32 %v425_v54, %v424_v52 }
 0x132   :  { %v377_v62 = vadd.f32 %v376_v49, %v375_v57  ;;  %v428_v63 = vadd.f32 %v427_v59, %v426_v58 }
 0x134   :  { %v430_v2 = vadd.f32 %v429_v0, %v428_v63  ;;  %v379_v4 = vadd.f32 %v378_v1, %v377_v62 }
 0x136   :  { %v432_v8 = vadd.f32 %v431_v5, %v430_v2  ;;  %v381_v9 = vadd.f32 %v380_v56, %v379_v4 }
 0x138   :  { %v434_v11 = vadd.f32 %v433_v6, %v432_v8  ;;  %v383_v12 = vadd.f32 %v382_v3, %v381_v9 }
 0x13a   :  { %v384_v14 = vrot.slane %v383_v12, 4  ;;  %v436_v15 = vadd.f32 %v435_v13, %v434_v11 }
 0x13c   :  { %v385_v10 = vadd.f32 %v384_v14, %v383_v12  ;;  %v437_v16 = vrot.slane %v436_v15, 4 }
 0x13e   :  { %v386_v17 = vrot.slane %v385_v10, 2  ;;  %v438_v18 = vadd.f32 %v437_v16, %v436_v15 }
 0x140   :  { %v387_v19 = vadd.f32 %v386_v17, %v385_v10  ;;  %v439_v20 = vrot.slane %v438_v18, 2 }
 0x142   :  { %v388_v21 = vrot.slane %v387_v19, 1  ;;  %v440_v22 = vadd.f32 %v439_v20, %v438_v18 }
 0x144   :  { %v441_v23 = vrot.slane %v440_v22, 1  ;;  %v389_v24 = vadd.f32 %v388_v21, %v387_v19 }
 0x146   :  { %v442_v25 = vadd.f32 %v441_v23, %v440_v22 }
 0x148   :  { %v444_v26 = vsel %vm443_vm3, %v389_v24, %v442_v25 }
 0x149   :  { %446 = vst.msk [vmem:[%s839_s3] sm:$0x3] %vm445_vm4, %v444_v26 }

// kernel: residual_block_pallas.8
= control target key start
LH: loop header
LB: loop body
LE: loop exit
PB: predicated region body
PF: predicated region fallthrough
CT: control target
= control target key end

     0   :  { %vm96_vm0 = vcmask 1041408   ;;  %vm71_vm1 = vcmask 31744   ;;  %vm197_vm2 = vcmask 64512   ;;  %vm304_vm3 = vcmask 1040384   ;;  %s537_s1 = inlined_call_operand.vmem [shape: bf16[4,8], index: 1, kind: input, shape index: {}]   ;;  %s538_s0 = inlined_call_operand.vmem [shape: bf16[128,4], index: 0, kind: input, shape index: {}]   ;;  %s539_s2 = inlined_call_operand.vmem [shape: f32[128,8], index: 2, kind: output, shape index: {0}]   ;;  %s540_s3 = inlined_call_operand.vmem [shape: f32[1,2,8], index: 3, kind: output, shape index: {1}]  }
   0x1   :  { %v30_v0 = vld [vmem:[%s537_s1] sm:$0x3]  ;;  %v364_v3 = vld [vmem:[%s538_s0 + $0x8] sm:$0xff]   ;;  %v365_v4 = vld [vmem:[%s538_s0 + $0x10] sm:$0xff]   ;;  %vm306_vm4 = vcmask 58368  }
   0x2   :  { %361 = vmatprep.subr.msk.bf16.mxu0 %vm96_vm0, %v30_v0  ;;  %v98_v1 = vsel %vm96_vm0, %v30_v0, 0  ;;  %v363_v2 = vld [vmem:[%s538_s0] sm:$0xff]   ;;  %362 = vmatprep.subr.msk.bf16.mxu1 %vm96_vm0, %v30_v0  ;;  %v368_v6 = vld [vmem:[%s538_s0 + $0x28] sm:$0xff]   ;;  %v369_v7 = vld [vmem:[%s538_s0 + $0x30] sm:$0xff]  }
   0x3   :  { %342 = vmatpush3.bf16.msra.mxu0 %v98_v1  ;;  %360 = vmatpush3.bf16.msra.mxu1 %v98_v1  ;;  %v367_v5 = vld [vmem:[%s538_s0 + $0x20] sm:$0xff]   ;;  %v366_v8 = vld [vmem:[%s538_s0 + $0x18] sm:$0xff]  }
   0x4   :  { %343 = vmatprep.mubr.msk.bf16.mxu0 %vm71_vm1, %v363_v2  ;;  %351 = vmatprep.mubr.msk.bf16.mxu1 %vm71_vm1, %v367_v5  ;;  %v370_v9 = vld [vmem:[%s538_s0 + $0x38] sm:$0xff]  }
   0x6   :  { %344 = vmatmul.mubr.msk.bf16.vlgmr.msra.gmra.mrb[0].mxu0 %vm71_vm1, %v364_v3  ;;  %352 = vmatmul.mubr.msk.bf16.vlgmr.msra.gmra.mrb[0].mxu1 %vm71_vm1, %v368_v6 }
   0x7   :  { %347 = vmatprep.mubr.msk.bf16.mxu0 %vm71_vm1, %v365_v4  ;;  %355 = vmatprep.mubr.msk.bf16.mxu1 %vm71_vm1, %v369_v7 }
   0xe   :  { %348 = vmatmul.mubr.msk.bf16.gmra.mrb[4].mxu0 %vm71_vm1, %v366_v8  ;;  %356 = vmatmul.mubr.msk.bf16.gmra.mrb[4].mxu1 %vm71_vm1, %v370_v9 }
  0xd9   :  { %v345_v10 = vpop.f32.mrb[0].mxu0  ;;  %v438_v15 = vpop.f32.mrb[0].mxu1 }
  0xda   :  { %200 = vst.msk [vmem:[%s539_s2 + $0x10] sm:$0xff] %vm197_vm2, %v345_v10  ;;  %v134_v11 = vpop.f32.mrb[1].mxu0  ;;  %v253_v16 = vmul.f32 %v345_v10, %v345_v10  ;;  %208 = vst.msk [vmem:[%s539_s2 + $0x50] sm:$0xff] %vm197_vm2, %v438_v15  ;;  %v166_v20 = vpop.f32.mrb[1].mxu1  ;;  %v217_v23 = vsel %vm197_vm2, %v345_v10, 0.0  ;;  %v261_v5 = vmul.f32 %v438_v15, %v438_v15  ;;  %v233_v9 = vsel %vm197_vm2, %v438_v15, 0.0 }
  0xdb   :  { %198 = vst.msk [vmem:[%s539_s2] sm:$0xff] %vm197_vm2, %v134_v11  ;;  %v251_v12 = vmul.f32 %v134_v11, %v134_v11  ;;  %v346_v13 = vpop.f32.mrb[2].mxu0  ;;  %v214_v17 = vsel %vm197_vm2, %v134_v11, 0.0  ;;  %206 = vst.msk [vmem:[%s539_s2 + $0x40] sm:$0xff] %vm197_vm2, %v166_v20  ;;  %v455_v22 = vpop.f32.mrb[2].mxu1  ;;  %v259_v55 = vmul.f32 %v166_v20, %v166_v20  ;;  %v229_v61 = vsel %vm197_vm2, %v166_v20, 0.0 }
  0xdc   :  { %201 = vst.msk [vmem:[%s539_s2 + $0x18] sm:$0xff] %vm197_vm2, %v346_v13  ;;  %v137_v14 = vpop.f32.mrb[3].mxu0  ;;  %v254_v25 = vmul.f32 %v346_v13, %v346_v13  ;;  %209 = vst.msk [vmem:[%s539_s2 + $0x58] sm:$0xff] %vm197_vm2, %v455_v22  ;;  %v169_v27 = vpop.f32.mrb[3].mxu1  ;;  %v270_v30 = vsel %vm197_vm2, %v253_v16, 0.0  ;;  %v219_v31 = vsel %vm197_vm2, %v346_v13, 0.0  ;;  %v262_v10 = vmul.f32 %v455_v22, %v455_v22 }
  0xdd   :  { %199 = vst.msk [vmem:[%s539_s2 + $0x8] sm:$0xff] %vm197_vm2, %v137_v14  ;;  %v215_v18 = vsel %vm197_vm2, %v137_v14, 0.0  ;;  %v252_v19 = vmul.f32 %v137_v14, %v137_v14  ;;  %v267_v24 = vsel %vm197_vm2, %v251_v12, 0.0  ;;  %207 = vst.msk [vmem:[%s539_s2 + $0x48] sm:$0xff] %vm197_vm2, %v169_v27  ;;  %v282_v1 = vsel %vm197_vm2, %v259_v55, 0.0 }
  0xde   :  { %v216_v21 = vadd.f32 %v215_v18, %v214_v17  ;;  %v272_v36 = vsel %vm197_vm2, %v254_v25, 0.0  ;;  %v260_v2 = vmul.f32 %v169_v27, %v169_v27  ;;  %v231_v6 = vsel %vm197_vm2, %v169_v27, 0.0 }
  0xdf   :  { %v268_v26 = vsel %vm197_vm2, %v252_v19, 0.0  ;;  %v286_v16 = vsel %vm197_vm2, %v261_v5, 0.0  ;;  %v235_v17 = vsel %vm197_vm2, %v455_v22, 0.0 }
  0xe0   :  { %v218_v28 = vadd.f32 %v217_v23, %v216_v21  ;;  %v269_v29 = vadd.f32 %v268_v26, %v267_v24  ;;  %v284_v11 = vsel %vm197_vm2, %v260_v2, 0.0  ;;  %v288_v21 = vsel %vm197_vm2, %v262_v10, 0.0 }
  0xe1   :  { %v349_v32 = vpop.f32.mrb[4].mxu0  ;;  %v357_v43 = vpop.f32.mrb[4].mxu1 }
  0xe2   :  { %v271_v33 = vadd.f32 %v270_v30, %v269_v29  ;;  %204 = vst.msk [vmem:[%s539_s2 + $0x30] sm:$0xff] %vm197_vm2, %v349_v32  ;;  %v150_v34 = vpop.f32.mrb[5].mxu0  ;;  %v220_v35 = vadd.f32 %v219_v31, %v218_v28  ;;  %v257_v44 = vmul.f32 %v349_v32, %v349_v32  ;;  %212 = vst.msk [vmem:[%s539_s2 + $0x70] sm:$0xff] %vm197_vm2, %v357_v43  ;;  %v182_v48 = vpop.f32.mrb[5].mxu1  ;;  %v225_v52 = vsel %vm197_vm2, %v349_v32, 0.0 }
  0xe3   :  { %202 = vst.msk [vmem:[%s539_s2 + $0x20] sm:$0xff] %vm197_vm2, %v150_v34  ;;  %v221_v37 = vsel %vm197_vm2, %v150_v34, 0.0  ;;  %v255_v38 = vmul.f32 %v150_v34, %v150_v34  ;;  %v350_v39 = vpop.f32.mrb[6].mxu0  ;;  %210 = vst.msk [vmem:[%s539_s2 + $0x60] sm:$0xff] %vm197_vm2, %v182_v48  ;;  %v358_v51 = vpop.f32.mrb[6].mxu1  ;;  %v263_v12 = vmul.f32 %v182_v48, %v182_v48  ;;  %v237_v18 = vsel %vm197_vm2, %v182_v48, 0.0 }
  0xe4   :  { %v222_v40 = vadd.f32 %v221_v37, %v220_v35  ;;  %v273_v41 = vadd.f32 %v272_v36, %v271_v33  ;;  %205 = vst.msk [vmem:[%s539_s2 + $0x38] sm:$0xff] %vm197_vm2, %v350_v39  ;;  %v153_v42 = vpop.f32.mrb[7].mxu0  ;;  %v258_v53 = vmul.f32 %v350_v39, %v350_v39  ;;  %213 = vst.msk [vmem:[%s539_s2 + $0x78] sm:$0xff] %vm197_vm2, %v358_v51  ;;  %v185_v56 = vpop.f32.mrb[7].mxu1  ;;  %v278_v59 = vsel %vm197_vm2, %v257_v44, 0.0 }
  0xe5   :  { %v274_v45 = vsel %vm197_vm2, %v255_v38, 0.0  ;;  %203 = vst.msk [vmem:[%s539_s2 + $0x28] sm:$0xff] %vm197_vm2, %v153_v42  ;;  %v223_v46 = vsel %vm197_vm2, %v153_v42, 0.0  ;;  %v256_v47 = vmul.f32 %v153_v42, %v153_v42  ;;  %211 = vst.msk [vmem:[%s539_s2 + $0x68] sm:$0xff] %vm197_vm2, %v185_v56  ;;  %v227_v60 = vsel %vm197_vm2, %v350_v39, 0.0 }
  0xe6   :  { %v275_v49 = vadd.f32 %v274_v45, %v273_v41  ;;  %v224_v50 = vadd.f32 %v223_v46, %v222_v40  ;;  %v280_v0 = vsel %vm197_vm2, %v258_v53, 0.0  ;;  %v290_v15 = vsel %vm197_vm2, %v263_v12, 0.0 }
  0xe7   :  { %v276_v54 = vsel %vm197_vm2, %v256_v47, 0.0  ;;  %v264_v23 = vmul.f32 %v185_v56, %v185_v56  ;;  %v265_v26 = vmul.f32 %v357_v43, %v357_v43  ;;  %v239_v27 = vsel %vm197_vm2, %v185_v56, 0.0 }
  0xe8   :  { %v226_v57 = vadd.f32 %v225_v52, %v224_v50  ;;  %v277_v58 = vadd.f32 %v276_v54, %v275_v49  ;;  %v241_v30 = vsel %vm197_vm2, %v357_v43, 0.0  ;;  %v266_v31 = vmul.f32 %v358_v51, %v358_v51 }
  0xe9   :  { %v292_v22 = vsel %vm197_vm2, %v264_v23, 0.0  ;;  %v294_v34 = vsel %vm197_vm2, %v265_v26, 0.0  ;;  %v243_v35 = vsel %vm197_vm2, %v358_v51, 0.0 }
  0xea   :  { %v279_v62 = vadd.f32 %v278_v59, %v277_v58  ;;  %v228_v63 = vadd.f32 %v227_v60, %v226_v57  ;;  %v296_v38 = vsel %vm197_vm2, %v266_v31, 0.0 }
  0xec   :  { %v230_v3 = vadd.f32 %v229_v61, %v228_v63  ;;  %v281_v4 = vadd.f32 %v280_v0, %v279_v62 }
  0xee   :  { %v283_v7 = vadd.f32 %v282_v1, %v281_v4  ;;  %v232_v8 = vadd.f32 %v231_v6, %v230_v3 }
  0xf0   :  { %v234_v13 = vadd.f32 %v233_v9, %v232_v8  ;;  %v285_v14 = vadd.f32 %v284_v11, %v283_v7 }
  0xf2   :  { %v287_v19 = vadd.f32 %v286_v16, %v285_v14  ;;  %v236_v20 = vadd.f32 %v235_v17, %v234_v13 }
  0xf4   :  { %v238_v24 = vadd.f32 %v237_v18, %v236_v20  ;;  %v289_v25 = vadd.f32 %v288_v21, %v287_v19 }
  0xf6   :  { %v291_v28 = vadd.f32 %v290_v15, %v289_v25  ;;  %v240_v29 = vadd.f32 %v239_v27, %v238_v24 }
  0xf8   :  { %v242_v32 = vadd.f32 %v241_v30, %v240_v29  ;;  %v293_v33 = vadd.f32 %v292_v22, %v291_v28 }
  0xfa   :  { %v244_v36 = vadd.f32 %v243_v35, %v242_v32  ;;  %v295_v37 = vadd.f32 %v294_v34, %v293_v33 }
  0xfc   :  { %v245_v39 = vrot.slane %v244_v36, 4  ;;  %v297_v40 = vadd.f32 %v296_v38, %v295_v37 }
  0xfe   :  { %v246_v41 = vadd.f32 %v245_v39, %v244_v36  ;;  %v298_v42 = vrot.slane %v297_v40, 4 }
 0x100   :  { %v247_v44 = vrot.slane %v246_v41, 2  ;;  %v299_v45 = vadd.f32 %v298_v42, %v297_v40 }
 0x102   :  { %v248_v43 = vadd.f32 %v247_v44, %v246_v41  ;;  %v300_v46 = vrot.slane %v299_v45, 2 }
 0x104   :  { %v249_v47 = vrot.slane %v248_v43, 1  ;;  %v301_v48 = vadd.f32 %v300_v46, %v299_v45 }
 0x106   :  { %v302_v49 = vrot.slane %v301_v48, 1  ;;  %v250_v50 = vadd.f32 %v249_v47, %v248_v43 }
 0x108   :  { %v303_v52 = vadd.f32 %v302_v49, %v301_v48 }
 0x10a   :  { %v305_v51 = vsel %vm304_vm3, %v250_v50, %v303_v52 }
 0x10b   :  { %307 = vst.msk [vmem:[%s540_s3] sm:$0x3] %vm306_vm4, %v305_v51 }

// kernel: residual_block_pallas.9
= control target key start
LH: loop header
LB: loop body
LE: loop exit
PB: predicated region body
PF: predicated region fallthrough
CT: control target
= control target key end

     0   :  { %vm180_vm0 = vcmask 64512   ;;  %s490_s0 = inlined_call_operand.vmem [shape: f32[128,8], index: 0, kind: input, shape index: {}]   ;;  %s491_s1 = inlined_call_operand.vmem [shape: f32[1,8], index: 1, kind: input, shape index: {}]   ;;  %s492_s2 = inlined_call_operand.vmem [shape: f32[1,8], index: 2, kind: input, shape index: {}]   ;;  %s493_s3 = inlined_call_operand.vmem [shape: f32[128,8], index: 3, kind: input, shape index: {}]   ;;  %s494_s4 = inlined_call_operand.vmem [shape: f32[1,8], index: 4, kind: input, shape index: {}]   ;;  %s495_s5 = inlined_call_operand.vmem [shape: f32[1,8], index: 5, kind: input, shape index: {}]   ;;  %s496_s6 = inlined_call_operand.hbm [shape: f32[128,8], index: 6, kind: output, shape index: {}]  }
   0x1   :  { %v24_v0 = vld [vmem:[%s490_s0] sm:$0xff]  ;;  %v25_v8 = vld [vmem:[%s490_s0 + $0x8] sm:$0xff]  ;;  %v26_v10 = vld [vmem:[%s490_s0 + $0x10] sm:$0xff] }
   0x2   :  { %v288_v1 = vld [vmem:[%s491_s1] ss:$0 sm:$0xff]  ;;  %v87_v9 = vld [vmem:[%s493_s3 + $0x8] sm:$0xff]  ;;  %v88_v15 = vld [vmem:[%s493_s3 + $0x10] sm:$0xff] }
   0x3   :  { %v293_v2 = vld [vmem:[%s492_s2] ss:$0 sm:$0xff]  ;;  %v47_v3 = vmul.f32 %v288_v1, %v24_v0  ;;  %v48_v12 = vmul.f32 %v288_v1, %v25_v8  ;;  %v49_v14 = vmul.f32 %v288_v1, %v26_v10  ;;  %v27_v16 = vld [vmem:[%s490_s0 + $0x18] sm:$0xff]  ;;  %v29_v24 = vld [vmem:[%s490_s0 + $0x28] sm:$0xff] }
   0x4   :  { %v86_v4 = vld [vmem:[%s493_s3] sm:$0xff]  ;;  %v89_v17 = vld [vmem:[%s493_s3 + $0x18] sm:$0xff]  ;;  %v50_v20 = vmul.f32 %v288_v1, %v27_v16  ;;  %v91_v29 = vld [vmem:[%s493_s3 + $0x28] sm:$0xff]  ;;  %v52_v38 = vmul.f32 %v288_v1, %v29_v24 }
   0x5   :  { %v302_v5 = vld [vmem:[%s494_s4] ss:$0 sm:$0xff]  ;;  %v70_v11 = vadd.f32 %v293_v2, %v47_v3  ;;  %v71_v25 = vadd.f32 %v293_v2, %v48_v12  ;;  %v72_v27 = vadd.f32 %v293_v2, %v49_v14  ;;  %v30_v34 = vld [vmem:[%s490_s0 + $0x30] sm:$0xff]  ;;  %v31_v44 = vld [vmem:[%s490_s0 + $0x38] sm:$0xff] }
   0x6   :  { %v307_v6 = vld [vmem:[%s495_s5] ss:$0 sm:$0xff]  ;;  %v109_v7 = vmul.f32 %v302_v5, %v86_v4  ;;  %v110_v13 = vmul.f32 %v302_v5, %v87_v9  ;;  %v111_v19 = vmul.f32 %v302_v5, %v88_v15  ;;  %v112_v21 = vmul.f32 %v302_v5, %v89_v17  ;;  %v92_v39 = vld [vmem:[%s493_s3 + $0x30] sm:$0xff]  ;;  %v93_v45 = vld [vmem:[%s493_s3 + $0x38] sm:$0xff] }
   0x7   :  { %v28_v22 = vld [vmem:[%s490_s0 + $0x20] sm:$0xff]  ;;  %v73_v32 = vadd.f32 %v293_v2, %v50_v20  ;;  %v114_v43 = vmul.f32 %v302_v5, %v91_v29  ;;  %v75_v48 = vadd.f32 %v293_v2, %v52_v38  ;;  %v53_v49 = vmul.f32 %v288_v1, %v30_v34  ;;  %v33_v56 = vld [vmem:[%s490_s0 + $0x48] sm:$0xff]  ;;  %v34_v4 = vld [vmem:[%s490_s0 + $0x50] sm:$0xff] }
   0x8   :  { %v132_v18 = vadd.f32 %v307_v6, %v109_v7  ;;  %v90_v23 = vld [vmem:[%s493_s3 + $0x20] sm:$0xff]  ;;  %v133_v26 = vadd.f32 %v307_v6, %v110_v13  ;;  %v51_v28 = vmul.f32 %v288_v1, %v28_v22  ;;  %v134_v31 = vadd.f32 %v307_v6, %v111_v19  ;;  %v95_v3 = vld [vmem:[%s493_s3 + $0x48] sm:$0xff] }
   0x9   :  { %v135_v33 = vadd.f32 %v307_v6, %v112_v21  ;;  %v113_v37 = vmul.f32 %v302_v5, %v90_v23  ;;  %v32_v50 = vld [vmem:[%s490_s0 + $0x40] sm:$0xff]  ;;  %v137_v54 = vadd.f32 %v307_v6, %v114_v43  ;;  %v115_v55 = vmul.f32 %v302_v5, %v92_v39 }
   0xa   :  { %v148_v30 = vadd.f32 %v132_v18, %v70_v11  ;;  %v149_v35 = vadd.f32 %v133_v26, %v71_v25  ;;  %v74_v36 = vadd.f32 %v293_v2, %v51_v28  ;;  %v150_v41 = vadd.f32 %v134_v31, %v72_v27  ;;  %v94_v51 = vld [vmem:[%s493_s3 + $0x40] sm:$0xff] }
   0xb   :  { %v151_v42 = vadd.f32 %v135_v33, %v73_v32  ;;  %v136_v47 = vadd.f32 %v307_v6, %v113_v37  ;;  %v76_v58 = vadd.f32 %v293_v2, %v53_v49  ;;  %v54_v59 = vmul.f32 %v288_v1, %v31_v44 }
   0xc   :  { %v164_v40 = vmax.f32 %v148_v30, 0.0  ;;  %v165_v46 = vmax.f32 %v149_v35, 0.0  ;;  %v166_v52 = vmax.f32 %v150_v41, 0.0  ;;  %v116_v60 = vmul.f32 %v302_v5, %v93_v45 }
   0xd   :  { %v167_v53 = vmax.f32 %v151_v42, 0.0  ;;  %v152_v57 = vadd.f32 %v136_v47, %v74_v36  ;;  %v153_v61 = vadd.f32 %v137_v54, %v75_v48  ;;  %v138_v62 = vadd.f32 %v307_v6, %v115_v55 }
   0xe   :  { %181 = vst.msk [vmem:[#allocation2] sm:$0xff] %vm180_vm0, %v164_v40  ;;  %182 = vst.msk [vmem:[#allocation2 + $0x8] sm:$0xff] %vm180_vm0, %v165_v46  ;;  %v55_v63 = vmul.f32 %v288_v1, %v32_v50  ;;  %v117_v0 = vmul.f32 %v302_v5, %v94_v51 }
   0xf   :  { %183 = vst.msk [vmem:[#allocation2 + $0x10] sm:$0xff] %vm180_vm0, %v166_v52  ;;  %184 = vst.msk [vmem:[#allocation2 + $0x18] sm:$0xff] %vm180_vm0, %v167_v53 }
  0x10   :  { %11 = vsyncpa [#allocation3], 0  ;;  %v168_v7 = vmax.f32 %v152_v57, 0.0  ;;  %v77_v8 = vadd.f32 %v293_v2, %v54_v59  ;;  %v139_v9 = vadd.f32 %v307_v6, %v116_v60  ;;  %v56_v10 = vmul.f32 %v288_v1, %v33_v56  ;;  %v96_v11 = vld [vmem:[%s493_s3 + $0x50] sm:$0xff]  ;;  %v35_v12 = vld [vmem:[%s490_s0 + $0x58] sm:$0xff] }
  0x11   :  { %v169_v13 = vmax.f32 %v153_v61, 0.0  ;;  %v154_v14 = vadd.f32 %v138_v62, %v76_v58  ;;  %v78_v15 = vadd.f32 %v293_v2, %v55_v63  ;;  %v140_v16 = vadd.f32 %v307_v6, %v117_v0  ;;  %v97_v17 = vld [vmem:[%s493_s3 + $0x58] sm:$0xff]  ;;  %v36_v22 = vld [vmem:[%s490_s0 + $0x60] sm:$0xff]  ;;  %v37_v28 = vld [vmem:[%s490_s0 + $0x68] sm:$0xff] }
  0x12   :  { %185 = vst.msk [vmem:[#allocation2 + $0x20] sm:$0xff] %vm180_vm0, %v168_v7  ;;  %v155_v18 = vadd.f32 %v139_v9, %v77_v8  ;;  %v79_v19 = vadd.f32 %v293_v2, %v56_v10  ;;  %v118_v20 = vmul.f32 %v302_v5, %v95_v3  ;;  %v57_v21 = vmul.f32 %v288_v1, %v34_v4  ;;  %v98_v27 = vld [vmem:[%s493_s3 + $0x60] sm:$0xff]  ;;  %v99_v33 = vld [vmem:[%s493_s3 + $0x68] sm:$0xff]  ;;  %v38_v34 = vld [vmem:[%s490_s0 + $0x70] sm:$0xff] }
  0x13   :  { %186 = vst.msk [vmem:[#allocation2 + $0x28] sm:$0xff] %vm180_vm0, %v169_v13  ;;  %v170_v23 = vmax.f32 %v154_v14, 0.0  ;;  %v156_v24 = vadd.f32 %v140_v16, %v78_v15  ;;  %v119_v25 = vmul.f32 %v302_v5, %v96_v11  ;;  %v58_v26 = vmul.f32 %v288_v1, %v35_v12  ;;  %v100_v43 = vld [vmem:[%s493_s3 + $0x70] sm:$0xff]  ;;  %v39_v48 = vld [vmem:[%s490_s0 + $0x78] sm:$0xff]  ;;  %s244_s0 = smov [#allocation2]  }
  0x14   :  { %v171_v29 = vmax.f32 %v155_v18, 0.0  ;;  %v141_v30 = vadd.f32 %v307_v6, %v118_v20  ;;  %v80_v31 = vadd.f32 %v293_v2, %v57_v21  ;;  %v120_v32 = vmul.f32 %v302_v5, %v97_v17  ;;  %v101_v49 = vld [vmem:[%s493_s3 + $0x78] sm:$0xff]  ;;  %s202_s3 = sshll.u32 %s244_s0, 4  ;;  %s203_s3 = int_to_ptr.vmem [resolvable:$true] %s202_s3 }
  0x15   :  { %187 = vst.msk [vmem:[#allocation2 + $0x30] sm:$0xff] %vm180_vm0, %v170_v23  ;;  %v172_v35 = vmax.f32 %v156_v24, 0.0  ;;  %v142_v36 = vadd.f32 %v307_v6, %v119_v25  ;;  %v81_v37 = vadd.f32 %v293_v2, %v58_v26  ;;  %v59_v38 = vmul.f32 %v288_v1, %v36_v22  ;;  %s220_s11 = scalar_lea.vmem %s203_s3, 2048  ;;  %p225_p1 = scmp.lt.s32.totalorder %s203_s3, %s203_s3 }
  0x16   :  { %188 = vst.msk [vmem:[#allocation2 + $0x38] sm:$0xff] %vm180_vm0, %v171_v29  ;;  %v157_v39 = vadd.f32 %v141_v30, %v79_v19  ;;  %v143_v40 = vadd.f32 %v307_v6, %v120_v32  ;;  %v121_v41 = vmul.f32 %v302_v5, %v98_v27  ;;  %v60_v42 = vmul.f32 %v288_v1, %v37_v28  ;;  %p221_p0 = scmp.ne.s32.totalorder %s203_s3, %s220_s11  ;;  %p226_p2 = scmp.lt.s32.totalorder %s220_s11, %s220_s11 }
  0x17   :  { %189 = vst.msk [vmem:[#allocation2 + $0x40] sm:$0xff] %vm180_vm0, %v172_v35  ;;  %v158_v44 = vadd.f32 %v142_v36, %v80_v31  ;;  %v82_v45 = vadd.f32 %v293_v2, %v59_v38  ;;  %v122_v46 = vmul.f32 %v302_v5, %v99_v33  ;;  %v61_v47 = vmul.f32 %v288_v1, %v38_v34 }
  0x18   :  { %v173_v50 = vmax.f32 %v157_v39, 0.0  ;;  %v159_v51 = vadd.f32 %v143_v40, %v81_v37  ;;  %v144_v52 = vadd.f32 %v307_v6, %v121_v41  ;;  %v83_v53 = vadd.f32 %v293_v2, %v60_v42  ;;  %p227_p3 = por %p226_p2, %p225_p1 }
  0x19   :  { %v174_v54 = vmax.f32 %v158_v44, 0.0  ;;  %v145_v55 = vadd.f32 %v307_v6, %v122_v46  ;;  %v84_v56 = vadd.f32 %v293_v2, %v61_v47  ;;  %v123_v57 = vmul.f32 %v302_v5, %v100_v43 }
  0x1a   :  { %190 = vst.msk [vmem:[#allocation2 + $0x48] sm:$0xff] %vm180_vm0, %v173_v50  ;;  %v175_v58 = vmax.f32 %v159_v51, 0.0  ;;  %v160_v59 = vadd.f32 %v144_v52, %v82_v45  ;;  %v62_v60 = vmul.f32 %v288_v1, %v39_v48  ;;  %v124_v61 = vmul.f32 %v302_v5, %v101_v49  ;;  %p228_p4 = pnand %p227_p3, %p221_p0 }
  0x1b   :  { %191 = vst.msk [vmem:[#allocation2 + $0x50] sm:$0xff] %vm180_vm0, %v174_v54  ;;  %v161_v62 = vadd.f32 %v145_v55, %v83_v53  ;;  %v146_v63 = vadd.f32 %v307_v6, %v123_v57 }
  0x1c   :  { %192 = vst.msk [vmem:[#allocation2 + $0x58] sm:$0xff] %vm180_vm0, %v175_v58  ;;  %v176_v0 = vmax.f32 %v160_v59, 0.0  ;;  %v85_v3 = vadd.f32 %v293_v2, %v62_v60  ;;  %v147_v4 = vadd.f32 %v307_v6, %v124_v61 }
  0x1d   :  { %v177_v7 = vmax.f32 %v161_v62, 0.0  ;;  %v162_v8 = vadd.f32 %v146_v63, %v84_v56 }
  0x1e   :  { %193 = vst.msk [vmem:[#allocation2 + $0x60] sm:$0xff] %vm180_vm0, %v176_v0  ;;  %v163_v1 = vadd.f32 %v147_v4, %v85_v3 }
  0x1f   :  { %194 = vst.msk [vmem:[#allocation2 + $0x68] sm:$0xff] %vm180_vm0, %v177_v7  ;;  %v178_v5 = vmax.f32 %v162_v8, 0.0 }
  0x20   :  { %v179_v9 = vmax.f32 %v163_v1, 0.0 }
  0x21   :  { %195 = vst.msk [vmem:[#allocation2 + $0x70] sm:$0xff] %vm180_vm0, %v178_v5 }
  0x22   :  { %196 = vst.msk [vmem:[#allocation2 + $0x78] sm:$0xff] %vm180_vm0, %v179_v9 }
  0x23   :  { %231 = shalt.err (!%p228_p4)
}
  0x24   :  { %s232_s5 = scalar_lea.hbm %s496_s6, 2048 }
  0x25   :  { %p233_p5 = scmp.ne.s32.totalorder %s496_s6, %s232_s5  ;;  %p236_p6 = scmp.lt.u32.totalorder %s232_s5, %s496_s6 }
  0x27   :  { %p238_p7 = pnand %p236_p6, %p233_p5 }
  0x29   :  { %241 = shalt.err (!%p238_p7)
}
  0x2a   :  { %s245_s17 = smov 128   ;;  %s246_s18 = smov 8  }
  0x2b   :  { %208 = dma.vmem_to_hbm [thread:$0]  %s203_s3, 2048, %s496_s6, [#allocation3], %s245_s17, %s245_s17, %s246_s18  }
  0x2c   :  { %242 = dma.done.wait [#allocation3], 2048  }
  0x2d   :  { %243 = vsyncadd [#allocation3], 4294965248 }
  0x2e   :  { %212 = vsyncpa [#allocation3], 1 }

</bundles_post_ra>
